<compile_context>
chip_gen: v7x
topology: tpu7x:2x2x1
jax: 0.10.0
libtpu: 0.0.40
codegen_flags: <defaults>
</compile_context>

<pallas_src>
import jax
import jax.numpy as jnp
from jax.experimental import pallas as pl
from jax.experimental.pallas import tpu as pltpu


# ------------------------------ fused kernel ----------------------------------

def _make_fused_kernel(T, Bp, layer_dims, n_hidden):
    """layer_dims: [(in_size, hidden_size)] per layer; last entry = output LSTM.

    Weight columns are pre-permuted to gate order [i, f, o, g].
    """
    n_layers = len(layer_dims)
    C = layer_dims[-1][1]

    def kernel(lens_ref, x_ref, *rest):
        w_refs = rest[:3 * n_layers]          # (W_ih, W_hh, b) per layer
        out_ref = rest[3 * n_layers]          # (Bp, C)
        seq_sc = rest[3 * n_layers + 1]       # (T*Bp, H) inter-layer sequence

        lens_col = lens_ref[...]              # (Bp, 1) int32
        cur = x_ref[...]                      # (T*Bp, F) time-major flattened input
        out_acc = jnp.zeros((Bp, C), jnp.float32)

        for l in range(n_layers):
            _, H = layer_dims[l]
            w_ih = w_refs[3 * l][...]         # (in, 4H)
            w_hh = w_refs[3 * l + 1][...]     # (H, 4H)
            b = w_refs[3 * l + 2][...]        # (1, 4H)
            is_out = (l == n_layers - 1)
            apply_relu = (l == n_hidden - 1)

            # Hoisted input projection + bias: one matmul for all T timesteps,
            # off the recurrent critical path.
            gx = jnp.dot(cur, w_ih, preferred_element_type=jnp.float32) + b

            h = jnp.zeros((Bp, H), jnp.float32)
            c = jnp.zeros((Bp, H), jnp.float32)

            for t in range(T):                # statically unrolled time loop
                gates = gx[t * Bp:(t + 1) * Bp, :] + jnp.dot(
                    h, w_hh, preferred_element_type=jnp.float32)   # (Bp, 4H)
                # gate order [i, f, o, g]: one sigmoid over contiguous 3H lanes
                sig = jax.nn.sigmoid(gates[:, :3 * H])
                i_g = sig[:, 0 * H:1 * H]
                f_g = sig[:, 1 * H:2 * H]
                o_g = sig[:, 2 * H:3 * H]
                g_g = jnp.tanh(gates[:, 3 * H:4 * H])
                c = f_g * c + i_g * g_g
                h = o_g * jnp.tanh(c)
                if is_out:
                    # fused "last valid step" gather: capture h at t == lens-1
                    out_acc = jnp.where(lens_col == t + 1, h, out_acc)
                else:
                    # fuse the post-stack ReLU into the store of the last hidden layer
                    seq_sc[t * Bp:(t + 1) * Bp, :] = (
                        jnp.maximum(h, 0.0) if apply_relu else h)

            if not is_out:
                cur = seq_sc[...]             # (T*Bp, H) next layer's input

        # fused softmax over the class dim (epilogue, runs once)
        m = jnp.max(out_acc, axis=-1, keepdims=True)
        e = jnp.exp(out_acc - m)
        s = jnp.sum(e, axis=-1, keepdims=True)
        out_ref[...] = (e / s).astype(out_ref.dtype)

    return kernel


# ----------------------- parameter init (deterministic) -----------------------

def xavier_normal(key, shape):
    # shape is the PyTorch weight layout (out, in); biases are zero-init.
    fan_out, fan_in = shape
    std = (2.0 / (fan_in + fan_out)) ** 0.5
    return std * jax.random.normal(key, shape, dtype=jnp.float32)


def init_params(key, n_feats, layer_s, n_layer, n_class):
    params = []
    in_size = n_feats
    # self.hidden = nn.LSTM(n_feats, layer_s, num_layers=n_layer)
    for _ in range(n_layer):
        key, k1, k2 = jax.random.split(key, 3)
        w_ih = xavier_normal(k1, (4 * layer_s, in_size))
        w_hh = xavier_normal(k2, (4 * layer_s, layer_s))
        b = jnp.zeros((1, 4 * layer_s), jnp.float32)   # b_ih + b_hh (zeros)
        params.append((w_ih.T, w_hh.T, b))
        in_size = layer_s
    # self.output = nn.LSTM(layer_s, n_class)
    key, k1, k2 = jax.random.split(key, 3)
    w_ih = xavier_normal(k1, (4 * n_class, layer_s))
    w_hh = xavier_normal(k2, (4 * n_class, n_class))
    b = jnp.zeros((1, 4 * n_class), jnp.float32)
    params.append((w_ih.T, w_hh.T, b))
    return params


# --------------------------------- forward ------------------------------------

def _permute_gates(w, H):
    """Columns ordered [i, f, g, o] (PyTorch) -> [i, f, o, g] (kernel layout)."""
    return jnp.concatenate(
        [w[:, :2 * H], w[:, 3 * H:4 * H], w[:, 2 * H:3 * H]], axis=-1)


def baseline1_forward(params, x_btf, lens, n_layer):
    """x_btf: (B, T, F) padded batch_first.  Returns softmax probs (B, n_class).

    pack_padded_sequence is not needed: the LSTMs are causal, so the output at
    timestep lens-1 (what the module returns) is unchanged by processing the
    padded timesteps afterwards.
    """
    B, T, F = x_btf.shape
    layer_s = params[0][1].shape[0]        # W_hh of first hidden layer: (H, 4H)
    n_class = params[-1][1].shape[0]
    Bp = ((B + 7) // 8) * 8                # sublane-align the per-step row blocks

    # batch-pad, then time-major flatten: row (t, b) -> t*Bp + b
    xp = jnp.zeros((Bp, T, F), x_btf.dtype).at[:B].set(x_btf)
    x_flat = jnp.transpose(xp, (1, 0, 2)).reshape(T * Bp, F)
    lens_p = jnp.ones((Bp,), jnp.int32).at[:B].set(lens.astype(jnp.int32))
    lens2d = lens_p[:, None]               # (Bp, 1) int32, lives in VMEM

    layer_dims = [(F if l == 0 else layer_s, layer_s) for l in range(n_layer)]
    layer_dims.append((layer_s, n_class))
    kernel = _make_fused_kernel(T, Bp, layer_dims, n_layer)

    flat_w = []
    for (_, H), (w_ih, w_hh, b) in zip(layer_dims, params):
        flat_w += [_permute_gates(w_ih, H), _permute_gates(w_hh, H),
                   _permute_gates(b, H)]

    n_in = 2 + len(flat_w)
    out = pl.pallas_call(
        kernel,
        out_shape=jax.ShapeDtypeStruct((Bp, n_class), jnp.float32),
        in_specs=[pl.BlockSpec(memory_space=pltpu.MemorySpace.VMEM)] * n_in,
        out_specs=pl.BlockSpec(memory_space=pltpu.MemorySpace.VMEM),
        scratch_shapes=[pltpu.VMEM((T * Bp, layer_s), jnp.float32)],
    )(lens2d, x_flat, *flat_w)
    return out[:B]


# --------------------------- pure-JAX reference --------------------------------

def _lstm_layer_ref(x, w_ih, w_hh, b, apply_relu):
    T, B, _ = x.shape
    H = w_hh.shape[0]

    def step(carry, x_t):
        h, c = carry
        gates = x_t @ w_ih + h @ w_hh + b
        i = jax.nn.sigmoid(gates[:, :H])
        f = jax.nn.sigmoid(gates[:, H:2 * H])
        g = jnp.tanh(gates[:, 2 * H:3 * H])
        o = jax.nn.sigmoid(gates[:, 3 * H:])
        c = f * c + i * g
        h = o * jnp.tanh(c)
        y = jnp.maximum(h, 0.0) if apply_relu else h
        return (h, c), y

    init = (jnp.zeros((B, H), jnp.float32), jnp.zeros((B, H), jnp.float32))
    _, ys = jax.lax.scan(step, init, x)
    return ys


def baseline1_forward_ref(params, x_btf, lens, n_layer):
    x = jnp.transpose(x_btf, (1, 0, 2))
    for l in range(n_layer):
        w_ih, w_hh, b = params[l]
        x = _lstm_layer_ref(x, w_ih, w_hh, b, l == n_layer - 1)
    w_ih, w_hh, b = params[-1]
    preds = _lstm_layer_ref(x, w_ih, w_hh, b, False)
    B = preds.shape[1]
    last = preds[lens - 1, jnp.arange(B), :]
    return jax.nn.softmax(last, axis=-1)


# ----------------------------------- main --------------------------------------

if __name__ == "__main__":
    # data_params: n_feats=8, n_class=4; hyperparams: n_layer=2, layer_s=32
    B, T, F = 2, 8, 8
    layer_s, n_layer, n_class = 32, 2, 4

    key = jax.random.PRNGKey(0)
    kx, kp = jax.random.split(key)

    lens = jnp.array([8, 5], dtype=jnp.int32)     # variable-length sequences
    x = jax.random.normal(kx, (B, T, F), dtype=jnp.float32)
    # mimic nn.utils.rnn.pad_sequence: zero beyond each sequence's length
    mask = (jnp.arange(T)[None, :] < lens[:, None])[:, :, None]
    x = x * mask.astype(x.dtype)

    params = init_params(kp, F, layer_s, n_layer, n_class)

    fwd = jax.jit(baseline1_forward, static_argnums=(3,))
    out = jax.block_until_ready(fwd(params, x, lens, n_layer))
    assert out.shape == (B, n_class)

    ref = jax.block_until_ready(baseline1_forward_ref(params, x, lens, n_layer))
    assert jnp.allclose(out, ref, atol=1e-3, rtol=1e-3), (out, ref)

    # TODO(synk): autograd bookkeeping (requires_grad_, inp_for_grads) has no
    # forward-pass effect and is omitted.
    print("KERNEL_OK")
</pallas_src>

<mosaic_0001>
module attributes {stable_mosaic.version = 11 : i64} {
  func.func @kernel(%arg0: memref<8x1xi32, #tpu.memory_space<vmem>>, %arg1: memref<64x8xf32, #tpu.memory_space<vmem>>, %arg2: memref<8x128xf32, #tpu.memory_space<vmem>>, %arg3: memref<32x128xf32, #tpu.memory_space<vmem>>, %arg4: memref<1x128xf32, #tpu.memory_space<vmem>>, %arg5: memref<32x128xf32, #tpu.memory_space<vmem>>, %arg6: memref<32x128xf32, #tpu.memory_space<vmem>>, %arg7: memref<1x128xf32, #tpu.memory_space<vmem>>, %arg8: memref<32x16xf32, #tpu.memory_space<vmem>>, %arg9: memref<4x16xf32, #tpu.memory_space<vmem>>, %arg10: memref<1x16xf32, #tpu.memory_space<vmem>>, %arg11: memref<8x4xf32, #tpu.memory_space<vmem>>, %arg12: memref<64x32xf32, #tpu.memory_space<vmem>>) attributes {dimension_semantics = [], scalar_prefetch = 0 : i64, scratch_operands = 1 : i64, tpu.core_type = #tpu.core_type<tc>} {
    %c0 = arith.constant 0 : index
    %c0_0 = arith.constant 0 : index
    %0 = vector.load %arg0[%c0, %c0_0] : memref<8x1xi32, #tpu.memory_space<vmem>>, vector<8x1xi32>
    %c0_1 = arith.constant 0 : index
    %c0_2 = arith.constant 0 : index
    %1 = vector.load %arg1[%c0_1, %c0_2] : memref<64x8xf32, #tpu.memory_space<vmem>>, vector<64x8xf32>
    %cst = arith.constant 0.000000e+00 : f32
    %2 = vector.broadcast %cst : f32 to vector<8x4xf32>
    %c0_3 = arith.constant 0 : index
    %c0_4 = arith.constant 0 : index
    %3 = vector.load %arg2[%c0_3, %c0_4] : memref<8x128xf32, #tpu.memory_space<vmem>>, vector<8x128xf32>
    %c0_5 = arith.constant 0 : index
    %c0_6 = arith.constant 0 : index
    %4 = vector.load %arg3[%c0_5, %c0_6] : memref<32x128xf32, #tpu.memory_space<vmem>>, vector<32x128xf32>
    %c0_7 = arith.constant 0 : index
    %c0_8 = arith.constant 0 : index
    %5 = vector.load %arg4[%c0_7, %c0_8] : memref<1x128xf32, #tpu.memory_space<vmem>>, vector<1x128xf32>
    %cst_9 = arith.constant dense<0.000000e+00> : vector<64x128xf32>
    %6 = tpu.matmul %1, %3, %cst_9 {dimension_numbers = #tpu.dot_dimension_numbers<[1], [0], [0], [1], [0, 0, 1, 1], [], []>} : vector<64x8xf32>, vector<8x128xf32>, vector<64x128xf32> -> vector<64x128xf32>
    %7 = vector.broadcast %5 : vector<1x128xf32> to vector<64x128xf32>
    %8 = arith.addf %6, %7 : vector<64x128xf32>
    %cst_10 = arith.constant 0.000000e+00 : f32
    %9 = vector.broadcast %cst_10 : f32 to vector<8x32xf32>
    %cst_11 = arith.constant 0.000000e+00 : f32
    %10 = vector.broadcast %cst_11 : f32 to vector<8x32xf32>
    %11 = vector.extract_strided_slice %8 {offsets = [0, 0], sizes = [8, 128], strides = [1, 1]} : vector<64x128xf32> to vector<8x128xf32>
    %cst_12 = arith.constant dense<0.000000e+00> : vector<8x128xf32>
    %12 = tpu.matmul %9, %4, %cst_12 {dimension_numbers = #tpu.dot_dimension_numbers<[1], [0], [0], [1], [0, 0, 1, 1], [], []>} : vector<8x32xf32>, vector<32x128xf32>, vector<8x128xf32> -> vector<8x128xf32>
    %13 = arith.addf %11, %12 : vector<8x128xf32>
    %14 = vector.extract_strided_slice %13 {offsets = [0, 0], sizes = [8, 96], strides = [1, 1]} : vector<8x128xf32> to vector<8x96xf32>
    %15 = arith.negf %14 : vector<8x96xf32>
    %16 = math.exp %15 : vector<8x96xf32>
    %cst_13 = arith.constant 1.000000e+00 : f32
    %17 = vector.broadcast %cst_13 : f32 to vector<8x96xf32>
    %18 = arith.addf %17, %16 : vector<8x96xf32>
    %19 = arith.divf %17, %18 : vector<8x96xf32>
    %20 = vector.extract_strided_slice %19 {offsets = [0, 0], sizes = [8, 32], strides = [1, 1]} : vector<8x96xf32> to vector<8x32xf32>
    %21 = vector.extract_strided_slice %19 {offsets = [0, 32], sizes = [8, 32], strides = [1, 1]} : vector<8x96xf32> to vector<8x32xf32>
    %22 = vector.extract_strided_slice %19 {offsets = [0, 64], sizes = [8, 32], strides = [1, 1]} : vector<8x96xf32> to vector<8x32xf32>
    %23 = vector.extract_strided_slice %13 {offsets = [0, 96], sizes = [8, 32], strides = [1, 1]} : vector<8x128xf32> to vector<8x32xf32>
    %24 = math.tanh %23 : vector<8x32xf32>
    %25 = arith.mulf %21, %10 : vector<8x32xf32>
    %26 = arith.mulf %20, %24 : vector<8x32xf32>
    %27 = arith.addf %25, %26 : vector<8x32xf32>
    %28 = math.tanh %27 : vector<8x32xf32>
    %29 = arith.mulf %22, %28 : vector<8x32xf32>
    %c0_14 = arith.constant 0 : index
    %c0_15 = arith.constant 0 : index
    %30 = vector.load %arg12[%c0_14, %c0_15] : memref<64x32xf32, #tpu.memory_space<vmem>>, vector<8x32xf32>
    tpu.vector_store %arg12[%c0_14, %c0_15], %29 {strides = array<i32>} : memref<64x32xf32, #tpu.memory_space<vmem>>, vector<8x32xf32>,
    %31 = vector.extract_strided_slice %8 {offsets = [8, 0], sizes = [8, 128], strides = [1, 1]} : vector<64x128xf32> to vector<8x128xf32>
    %cst_16 = arith.constant dense<0.000000e+00> : vector<8x128xf32>
    %32 = tpu.matmul %29, %4, %cst_16 {dimension_numbers = #tpu.dot_dimension_numbers<[1], [0], [0], [1], [0, 0, 1, 1], [], []>} : vector<8x32xf32>, vector<32x128xf32>, vector<8x128xf32> -> vector<8x128xf32>
    %33 = arith.addf %31, %32 : vector<8x128xf32>
    %34 = vector.extract_strided_slice %33 {offsets = [0, 0], sizes = [8, 96], strides = [1, 1]} : vector<8x128xf32> to vector<8x96xf32>
    %35 = arith.negf %34 : vector<8x96xf32>
    %36 = math.exp %35 : vector<8x96xf32>
    %cst_17 = arith.constant 1.000000e+00 : f32
    %37 = vector.broadcast %cst_17 : f32 to vector<8x96xf32>
    %38 = arith.addf %37, %36 : vector<8x96xf32>
    %39 = arith.divf %37, %38 : vector<8x96xf32>
    %40 = vector.extract_strided_slice %39 {offsets = [0, 0], sizes = [8, 32], strides = [1, 1]} : vector<8x96xf32> to vector<8x32xf32>
    %41 = vector.extract_strided_slice %39 {offsets = [0, 32], sizes = [8, 32], strides = [1, 1]} : vector<8x96xf32> to vector<8x32xf32>
    %42 = vector.extract_strided_slice %39 {offsets = [0, 64], sizes = [8, 32], strides = [1, 1]} : vector<8x96xf32> to vector<8x32xf32>
    %43 = vector.extract_strided_slice %33 {offsets = [0, 96], sizes = [8, 32], strides = [1, 1]} : vector<8x128xf32> to vector<8x32xf32>
    %44 = math.tanh %43 : vector<8x32xf32>
    %45 = arith.mulf %41, %27 : vector<8x32xf32>
    %46 = arith.mulf %40, %44 : vector<8x32xf32>
    %47 = arith.addf %45, %46 : vector<8x32xf32>
    %48 = math.tanh %47 : vector<8x32xf32>
    %49 = arith.mulf %42, %48 : vector<8x32xf32>
    %c8 = arith.constant 8 : index
    %c0_18 = arith.constant 0 : index
    %50 = vector.load %arg12[%c8, %c0_18] : memref<64x32xf32, #tpu.memory_space<vmem>>, vector<8x32xf32>
    tpu.vector_store %arg12[%c8, %c0_18], %49 {strides = array<i32>} : memref<64x32xf32, #tpu.memory_space<vmem>>, vector<8x32xf32>,
    %51 = vector.extract_strided_slice %8 {offsets = [16, 0], sizes = [8, 128], strides = [1, 1]} : vector<64x128xf32> to vector<8x128xf32>
    %cst_19 = arith.constant dense<0.000000e+00> : vector<8x128xf32>
    %52 = tpu.matmul %49, %4, %cst_19 {dimension_numbers = #tpu.dot_dimension_numbers<[1], [0], [0], [1], [0, 0, 1, 1], [], []>} : vector<8x32xf32>, vector<32x128xf32>, vector<8x128xf32> -> vector<8x128xf32>
    %53 = arith.addf %51, %52 : vector<8x128xf32>
    %54 = vector.extract_strided_slice %53 {offsets = [0, 0], sizes = [8, 96], strides = [1, 1]} : vector<8x128xf32> to vector<8x96xf32>
    %55 = arith.negf %54 : vector<8x96xf32>
    %56 = math.exp %55 : vector<8x96xf32>
    %cst_20 = arith.constant 1.000000e+00 : f32
    %57 = vector.broadcast %cst_20 : f32 to vector<8x96xf32>
    %58 = arith.addf %57, %56 : vector<8x96xf32>
    %59 = arith.divf %57, %58 : vector<8x96xf32>
    %60 = vector.extract_strided_slice %59 {offsets = [0, 0], sizes = [8, 32], strides = [1, 1]} : vector<8x96xf32> to vector<8x32xf32>
    %61 = vector.extract_strided_slice %59 {offsets = [0, 32], sizes = [8, 32], strides = [1, 1]} : vector<8x96xf32> to vector<8x32xf32>
    %62 = vector.extract_strided_slice %59 {offsets = [0, 64], sizes = [8, 32], strides = [1, 1]} : vector<8x96xf32> to vector<8x32xf32>
    %63 = vector.extract_strided_slice %53 {offsets = [0, 96], sizes = [8, 32], strides = [1, 1]} : vector<8x128xf32> to vector<8x32xf32>
    %64 = math.tanh %63 : vector<8x32xf32>
    %65 = arith.mulf %61, %47 : vector<8x32xf32>
    %66 = arith.mulf %60, %64 : vector<8x32xf32>
    %67 = arith.addf %65, %66 : vector<8x32xf32>
    %68 = math.tanh %67 : vector<8x32xf32>
    %69 = arith.mulf %62, %68 : vector<8x32xf32>
    %c16 = arith.constant 16 : index
    %c0_21 = arith.constant 0 : index
    %70 = vector.load %arg12[%c16, %c0_21] : memref<64x32xf32, #tpu.memory_space<vmem>>, vector<8x32xf32>
    tpu.vector_store %arg12[%c16, %c0_21], %69 {strides = array<i32>} : memref<64x32xf32, #tpu.memory_space<vmem>>, vector<8x32xf32>,
    %71 = vector.extract_strided_slice %8 {offsets = [24, 0], sizes = [8, 128], strides = [1, 1]} : vector<64x128xf32> to vector<8x128xf32>
    %cst_22 = arith.constant dense<0.000000e+00> : vector<8x128xf32>
    %72 = tpu.matmul %69, %4, %cst_22 {dimension_numbers = #tpu.dot_dimension_numbers<[1], [0], [0], [1], [0, 0, 1, 1], [], []>} : vector<8x32xf32>, vector<32x128xf32>, vector<8x128xf32> -> vector<8x128xf32>
    %73 = arith.addf %71, %72 : vector<8x128xf32>
    %74 = vector.extract_strided_slice %73 {offsets = [0, 0], sizes = [8, 96], strides = [1, 1]} : vector<8x128xf32> to vector<8x96xf32>
    %75 = arith.negf %74 : vector<8x96xf32>
    %76 = math.exp %75 : vector<8x96xf32>
    %cst_23 = arith.constant 1.000000e+00 : f32
    %77 = vector.broadcast %cst_23 : f32 to vector<8x96xf32>
    %78 = arith.addf %77, %76 : vector<8x96xf32>
    %79 = arith.divf %77, %78 : vector<8x96xf32>
    %80 = vector.extract_strided_slice %79 {offsets = [0, 0], sizes = [8, 32], strides = [1, 1]} : vector<8x96xf32> to vector<8x32xf32>
    %81 = vector.extract_strided_slice %79 {offsets = [0, 32], sizes = [8, 32], strides = [1, 1]} : vector<8x96xf32> to vector<8x32xf32>
    %82 = vector.extract_strided_slice %79 {offsets = [0, 64], sizes = [8, 32], strides = [1, 1]} : vector<8x96xf32> to vector<8x32xf32>
    %83 = vector.extract_strided_slice %73 {offsets = [0, 96], sizes = [8, 32], strides = [1, 1]} : vector<8x128xf32> to vector<8x32xf32>
    %84 = math.tanh %83 : vector<8x32xf32>
    %85 = arith.mulf %81, %67 : vector<8x32xf32>
    %86 = arith.mulf %80, %84 : vector<8x32xf32>
    %87 = arith.addf %85, %86 : vector<8x32xf32>
    %88 = math.tanh %87 : vector<8x32xf32>
    %89 = arith.mulf %82, %88 : vector<8x32xf32>
    %c24 = arith.constant 24 : index
    %c0_24 = arith.constant 0 : index
    %90 = vector.load %arg12[%c24, %c0_24] : memref<64x32xf32, #tpu.memory_space<vmem>>, vector<8x32xf32>
    tpu.vector_store %arg12[%c24, %c0_24], %89 {strides = array<i32>} : memref<64x32xf32, #tpu.memory_space<vmem>>, vector<8x32xf32>,
    %91 = vector.extract_strided_slice %8 {offsets = [32, 0], sizes = [8, 128], strides = [1, 1]} : vector<64x128xf32> to vector<8x128xf32>
    %cst_25 = arith.constant dense<0.000000e+00> : vector<8x128xf32>
    %92 = tpu.matmul %89, %4, %cst_25 {dimension_numbers = #tpu.dot_dimension_numbers<[1], [0], [0], [1], [0, 0, 1, 1], [], []>} : vector<8x32xf32>, vector<32x128xf32>, vector<8x128xf32> -> vector<8x128xf32>
    %93 = arith.addf %91, %92 : vector<8x128xf32>
    %94 = vector.extract_strided_slice %93 {offsets = [0, 0], sizes = [8, 96], strides = [1, 1]} : vector<8x128xf32> to vector<8x96xf32>
    %95 = arith.negf %94 : vector<8x96xf32>
    %96 = math.exp %95 : vector<8x96xf32>
    %cst_26 = arith.constant 1.000000e+00 : f32
    %97 = vector.broadcast %cst_26 : f32 to vector<8x96xf32>
    %98 = arith.addf %97, %96 : vector<8x96xf32>
    %99 = arith.divf %97, %98 : vector<8x96xf32>
    %100 = vector.extract_strided_slice %99 {offsets = [0, 0], sizes = [8, 32], strides = [1, 1]} : vector<8x96xf32> to vector<8x32xf32>
    %101 = vector.extract_strided_slice %99 {offsets = [0, 32], sizes = [8, 32], strides = [1, 1]} : vector<8x96xf32> to vector<8x32xf32>
    %102 = vector.extract_strided_slice %99 {offsets = [0, 64], sizes = [8, 32], strides = [1, 1]} : vector<8x96xf32> to vector<8x32xf32>
    %103 = vector.extract_strided_slice %93 {offsets = [0, 96], sizes = [8, 32], strides = [1, 1]} : vector<8x128xf32> to vector<8x32xf32>
    %104 = math.tanh %103 : vector<8x32xf32>
    %105 = arith.mulf %101, %87 : vector<8x32xf32>
    %106 = arith.mulf %100, %104 : vector<8x32xf32>
    %107 = arith.addf %105, %106 : vector<8x32xf32>
    %108 = math.tanh %107 : vector<8x32xf32>
    %109 = arith.mulf %102, %108 : vector<8x32xf32>
    %c32 = arith.constant 32 : index
    %c0_27 = arith.constant 0 : index
    %110 = vector.load %arg12[%c32, %c0_27] : memref<64x32xf32, #tpu.memory_space<vmem>>, vector<8x32xf32>
    tpu.vector_store %arg12[%c32, %c0_27], %109 {strides = array<i32>} : memref<64x32xf32, #tpu.memory_space<vmem>>, vector<8x32xf32>,
    %111 = vector.extract_strided_slice %8 {offsets = [40, 0], sizes = [8, 128], strides = [1, 1]} : vector<64x128xf32> to vector<8x128xf32>
    %cst_28 = arith.constant dense<0.000000e+00> : vector<8x128xf32>
    %112 = tpu.matmul %109, %4, %cst_28 {dimension_numbers = #tpu.dot_dimension_numbers<[1], [0], [0], [1], [0, 0, 1, 1], [], []>} : vector<8x32xf32>, vector<32x128xf32>, vector<8x128xf32> -> vector<8x128xf32>
    %113 = arith.addf %111, %112 : vector<8x128xf32>
    %114 = vector.extract_strided_slice %113 {offsets = [0, 0], sizes = [8, 96], strides = [1, 1]} : vector<8x128xf32> to vector<8x96xf32>
    %115 = arith.negf %114 : vector<8x96xf32>
    %116 = math.exp %115 : vector<8x96xf32>
    %cst_29 = arith.constant 1.000000e+00 : f32
    %117 = vector.broadcast %cst_29 : f32 to vector<8x96xf32>
    %118 = arith.addf %117, %116 : vector<8x96xf32>
    %119 = arith.divf %117, %118 : vector<8x96xf32>
    %120 = vector.extract_strided_slice %119 {offsets = [0, 0], sizes = [8, 32], strides = [1, 1]} : vector<8x96xf32> to vector<8x32xf32>
    %121 = vector.extract_strided_slice %119 {offsets = [0, 32], sizes = [8, 32], strides = [1, 1]} : vector<8x96xf32> to vector<8x32xf32>
    %122 = vector.extract_strided_slice %119 {offsets = [0, 64], sizes = [8, 32], strides = [1, 1]} : vector<8x96xf32> to vector<8x32xf32>
    %123 = vector.extract_strided_slice %113 {offsets = [0, 96], sizes = [8, 32], strides = [1, 1]} : vector<8x128xf32> to vector<8x32xf32>
    %124 = math.tanh %123 : vector<8x32xf32>
    %125 = arith.mulf %121, %107 : vector<8x32xf32>
    %126 = arith.mulf %120, %124 : vector<8x32xf32>
    %127 = arith.addf %125, %126 : vector<8x32xf32>
    %128 = math.tanh %127 : vector<8x32xf32>
    %129 = arith.mulf %122, %128 : vector<8x32xf32>
    %c40 = arith.constant 40 : index
    %c0_30 = arith.constant 0 : index
    %130 = vector.load %arg12[%c40, %c0_30] : memref<64x32xf32, #tpu.memory_space<vmem>>, vector<8x32xf32>
    tpu.vector_store %arg12[%c40, %c0_30], %129 {strides = array<i32>} : memref<64x32xf32, #tpu.memory_space<vmem>>, vector<8x32xf32>,
    %131 = vector.extract_strided_slice %8 {offsets = [48, 0], sizes = [8, 128], strides = [1, 1]} : vector<64x128xf32> to vector<8x128xf32>
    %cst_31 = arith.constant dense<0.000000e+00> : vector<8x128xf32>
    %132 = tpu.matmul %129, %4, %cst_31 {dimension_numbers = #tpu.dot_dimension_numbers<[1], [0], [0], [1], [0, 0, 1, 1], [], []>} : vector<8x32xf32>, vector<32x128xf32>, vector<8x128xf32> -> vector<8x128xf32>
    %133 = arith.addf %131, %132 : vector<8x128xf32>
    %134 = vector.extract_strided_slice %133 {offsets = [0, 0], sizes = [8, 96], strides = [1, 1]} : vector<8x128xf32> to vector<8x96xf32>
    %135 = arith.negf %134 : vector<8x96xf32>
    %136 = math.exp %135 : vector<8x96xf32>
    %cst_32 = arith.constant 1.000000e+00 : f32
    %137 = vector.broadcast %cst_32 : f32 to vector<8x96xf32>
    %138 = arith.addf %137, %136 : vector<8x96xf32>
    %139 = arith.divf %137, %138 : vector<8x96xf32>
    %140 = vector.extract_strided_slice %139 {offsets = [0, 0], sizes = [8, 32], strides = [1, 1]} : vector<8x96xf32> to vector<8x32xf32>
    %141 = vector.extract_strided_slice %139 {offsets = [0, 32], sizes = [8, 32], strides = [1, 1]} : vector<8x96xf32> to vector<8x32xf32>
    %142 = vector.extract_strided_slice %139 {offsets = [0, 64], sizes = [8, 32], strides = [1, 1]} : vector<8x96xf32> to vector<8x32xf32>
    %143 = vector.extract_strided_slice %133 {offsets = [0, 96], sizes = [8, 32], strides = [1, 1]} : vector<8x128xf32> to vector<8x32xf32>
    %144 = math.tanh %143 : vector<8x32xf32>
    %145 = arith.mulf %141, %127 : vector<8x32xf32>
    %146 = arith.mulf %140, %144 : vector<8x32xf32>
    %147 = arith.addf %145, %146 : vector<8x32xf32>
    %148 = math.tanh %147 : vector<8x32xf32>
    %149 = arith.mulf %142, %148 : vector<8x32xf32>
    %c48 = arith.constant 48 : index
    %c0_33 = arith.constant 0 : index
    %150 = vector.load %arg12[%c48, %c0_33] : memref<64x32xf32, #tpu.memory_space<vmem>>, vector<8x32xf32>
    tpu.vector_store %arg12[%c48, %c0_33], %149 {strides = array<i32>} : memref<64x32xf32, #tpu.memory_space<vmem>>, vector<8x32xf32>,
    %151 = vector.extract_strided_slice %8 {offsets = [56, 0], sizes = [8, 128], strides = [1, 1]} : vector<64x128xf32> to vector<8x128xf32>
    %cst_34 = arith.constant dense<0.000000e+00> : vector<8x128xf32>
    %152 = tpu.matmul %149, %4, %cst_34 {dimension_numbers = #tpu.dot_dimension_numbers<[1], [0], [0], [1], [0, 0, 1, 1], [], []>} : vector<8x32xf32>, vector<32x128xf32>, vector<8x128xf32> -> vector<8x128xf32>
    %153 = arith.addf %151, %152 : vector<8x128xf32>
    %154 = vector.extract_strided_slice %153 {offsets = [0, 0], sizes = [8, 96], strides = [1, 1]} : vector<8x128xf32> to vector<8x96xf32>
    %155 = arith.negf %154 : vector<8x96xf32>
    %156 = math.exp %155 : vector<8x96xf32>
    %cst_35 = arith.constant 1.000000e+00 : f32
    %157 = vector.broadcast %cst_35 : f32 to vector<8x96xf32>
    %158 = arith.addf %157, %156 : vector<8x96xf32>
    %159 = arith.divf %157, %158 : vector<8x96xf32>
    %160 = vector.extract_strided_slice %159 {offsets = [0, 0], sizes = [8, 32], strides = [1, 1]} : vector<8x96xf32> to vector<8x32xf32>
    %161 = vector.extract_strided_slice %159 {offsets = [0, 32], sizes = [8, 32], strides = [1, 1]} : vector<8x96xf32> to vector<8x32xf32>
    %162 = vector.extract_strided_slice %159 {offsets = [0, 64], sizes = [8, 32], strides = [1, 1]} : vector<8x96xf32> to vector<8x32xf32>
    %163 = vector.extract_strided_slice %153 {offsets = [0, 96], sizes = [8, 32], strides = [1, 1]} : vector<8x128xf32> to vector<8x32xf32>
    %164 = math.tanh %163 : vector<8x32xf32>
    %165 = arith.mulf %161, %147 : vector<8x32xf32>
    %166 = arith.mulf %160, %164 : vector<8x32xf32>
    %167 = arith.addf %165, %166 : vector<8x32xf32>
    %168 = math.tanh %167 : vector<8x32xf32>
    %169 = arith.mulf %162, %168 : vector<8x32xf32>
    %c56 = arith.constant 56 : index
    %c0_36 = arith.constant 0 : index
    %170 = vector.load %arg12[%c56, %c0_36] : memref<64x32xf32, #tpu.memory_space<vmem>>, vector<8x32xf32>
    tpu.vector_store %arg12[%c56, %c0_36], %169 {strides = array<i32>} : memref<64x32xf32, #tpu.memory_space<vmem>>, vector<8x32xf32>,
    %c0_37 = arith.constant 0 : index
    %c0_38 = arith.constant 0 : index
    %171 = vector.load %arg12[%c0_37, %c0_38] : memref<64x32xf32, #tpu.memory_space<vmem>>, vector<64x32xf32>
    %c0_39 = arith.constant 0 : index
    %c0_40 = arith.constant 0 : index
    %172 = vector.load %arg5[%c0_39, %c0_40] : memref<32x128xf32, #tpu.memory_space<vmem>>, vector<32x128xf32>
    %c0_41 = arith.constant 0 : index
    %c0_42 = arith.constant 0 : index
    %173 = vector.load %arg6[%c0_41, %c0_42] : memref<32x128xf32, #tpu.memory_space<vmem>>, vector<32x128xf32>
    %c0_43 = arith.constant 0 : index
    %c0_44 = arith.constant 0 : index
    %174 = vector.load %arg7[%c0_43, %c0_44] : memref<1x128xf32, #tpu.memory_space<vmem>>, vector<1x128xf32>
    %cst_45 = arith.constant dense<0.000000e+00> : vector<64x128xf32>
    %175 = tpu.matmul %171, %172, %cst_45 {dimension_numbers = #tpu.dot_dimension_numbers<[1], [0], [0], [1], [0, 0, 1, 1], [], []>} : vector<64x32xf32>, vector<32x128xf32>, vector<64x128xf32> -> vector<64x128xf32>
    %176 = vector.broadcast %174 : vector<1x128xf32> to vector<64x128xf32>
    %177 = arith.addf %175, %176 : vector<64x128xf32>
    %cst_46 = arith.constant 0.000000e+00 : f32
    %178 = vector.broadcast %cst_46 : f32 to vector<8x32xf32>
    %cst_47 = arith.constant 0.000000e+00 : f32
    %179 = vector.broadcast %cst_47 : f32 to vector<8x32xf32>
    %180 = vector.extract_strided_slice %177 {offsets = [0, 0], sizes = [8, 128], strides = [1, 1]} : vector<64x128xf32> to vector<8x128xf32>
    %cst_48 = arith.constant dense<0.000000e+00> : vector<8x128xf32>
    %181 = tpu.matmul %178, %173, %cst_48 {dimension_numbers = #tpu.dot_dimension_numbers<[1], [0], [0], [1], [0, 0, 1, 1], [], []>} : vector<8x32xf32>, vector<32x128xf32>, vector<8x128xf32> -> vector<8x128xf32>
    %182 = arith.addf %180, %181 : vector<8x128xf32>
    %183 = vector.extract_strided_slice %182 {offsets = [0, 0], sizes = [8, 96], strides = [1, 1]} : vector<8x128xf32> to vector<8x96xf32>
    %184 = arith.negf %183 : vector<8x96xf32>
    %185 = math.exp %184 : vector<8x96xf32>
    %cst_49 = arith.constant 1.000000e+00 : f32
    %186 = vector.broadcast %cst_49 : f32 to vector<8x96xf32>
    %187 = arith.addf %186, %185 : vector<8x96xf32>
    %188 = arith.divf %186, %187 : vector<8x96xf32>
    %189 = vector.extract_strided_slice %188 {offsets = [0, 0], sizes = [8, 32], strides = [1, 1]} : vector<8x96xf32> to vector<8x32xf32>
    %190 = vector.extract_strided_slice %188 {offsets = [0, 32], sizes = [8, 32], strides = [1, 1]} : vector<8x96xf32> to vector<8x32xf32>
    %191 = vector.extract_strided_slice %188 {offsets = [0, 64], sizes = [8, 32], strides = [1, 1]} : vector<8x96xf32> to vector<8x32xf32>
    %192 = vector.extract_strided_slice %182 {offsets = [0, 96], sizes = [8, 32], strides = [1, 1]} : vector<8x128xf32> to vector<8x32xf32>
    %193 = math.tanh %192 : vector<8x32xf32>
    %194 = arith.mulf %190, %179 : vector<8x32xf32>
    %195 = arith.mulf %189, %193 : vector<8x32xf32>
    %196 = arith.addf %194, %195 : vector<8x32xf32>
    %197 = math.tanh %196 : vector<8x32xf32>
    %198 = arith.mulf %191, %197 : vector<8x32xf32>
    %cst_50 = arith.constant 0.000000e+00 : f32
    %199 = vector.broadcast %cst_50 : f32 to vector<8x32xf32>
    %200 = arith.maximumf %198, %199 : vector<8x32xf32>
    %c0_51 = arith.constant 0 : index
    %c0_52 = arith.constant 0 : index
    %201 = vector.load %arg12[%c0_51, %c0_52] : memref<64x32xf32, #tpu.memory_space<vmem>>, vector<8x32xf32>
    tpu.vector_store %arg12[%c0_51, %c0_52], %200 {strides = array<i32>} : memref<64x32xf32, #tpu.memory_space<vmem>>, vector<8x32xf32>,
    %202 = vector.extract_strided_slice %177 {offsets = [8, 0], sizes = [8, 128], strides = [1, 1]} : vector<64x128xf32> to vector<8x128xf32>
    %cst_53 = arith.constant dense<0.000000e+00> : vector<8x128xf32>
    %203 = tpu.matmul %198, %173, %cst_53 {dimension_numbers = #tpu.dot_dimension_numbers<[1], [0], [0], [1], [0, 0, 1, 1], [], []>} : vector<8x32xf32>, vector<32x128xf32>, vector<8x128xf32> -> vector<8x128xf32>
    %204 = arith.addf %202, %203 : vector<8x128xf32>
    %205 = vector.extract_strided_slice %204 {offsets = [0, 0], sizes = [8, 96], strides = [1, 1]} : vector<8x128xf32> to vector<8x96xf32>
    %206 = arith.negf %205 : vector<8x96xf32>
    %207 = math.exp %206 : vector<8x96xf32>
    %cst_54 = arith.constant 1.000000e+00 : f32
    %208 = vector.broadcast %cst_54 : f32 to vector<8x96xf32>
    %209 = arith.addf %208, %207 : vector<8x96xf32>
    %210 = arith.divf %208, %209 : vector<8x96xf32>
    %211 = vector.extract_strided_slice %210 {offsets = [0, 0], sizes = [8, 32], strides = [1, 1]} : vector<8x96xf32> to vector<8x32xf32>
    %212 = vector.extract_strided_slice %210 {offsets = [0, 32], sizes = [8, 32], strides = [1, 1]} : vector<8x96xf32> to vector<8x32xf32>
    %213 = vector.extract_strided_slice %210 {offsets = [0, 64], sizes = [8, 32], strides = [1, 1]} : vector<8x96xf32> to vector<8x32xf32>
    %214 = vector.extract_strided_slice %204 {offsets = [0, 96], sizes = [8, 32], strides = [1, 1]} : vector<8x128xf32> to vector<8x32xf32>
    %215 = math.tanh %214 : vector<8x32xf32>
    %216 = arith.mulf %212, %196 : vector<8x32xf32>
    %217 = arith.mulf %211, %215 : vector<8x32xf32>
    %218 = arith.addf %216, %217 : vector<8x32xf32>
    %219 = math.tanh %218 : vector<8x32xf32>
    %220 = arith.mulf %213, %219 : vector<8x32xf32>
    %cst_55 = arith.constant 0.000000e+00 : f32
    %221 = vector.broadcast %cst_55 : f32 to vector<8x32xf32>
    %222 = arith.maximumf %220, %221 : vector<8x32xf32>
    %c8_56 = arith.constant 8 : index
    %c0_57 = arith.constant 0 : index
    %223 = vector.load %arg12[%c8_56, %c0_57] : memref<64x32xf32, #tpu.memory_space<vmem>>, vector<8x32xf32>
    tpu.vector_store %arg12[%c8_56, %c0_57], %222 {strides = array<i32>} : memref<64x32xf32, #tpu.memory_space<vmem>>, vector<8x32xf32>,
    %224 = vector.extract_strided_slice %177 {offsets = [16, 0], sizes = [8, 128], strides = [1, 1]} : vector<64x128xf32> to vector<8x128xf32>
    %cst_58 = arith.constant dense<0.000000e+00> : vector<8x128xf32>
    %225 = tpu.matmul %220, %173, %cst_58 {dimension_numbers = #tpu.dot_dimension_numbers<[1], [0], [0], [1], [0, 0, 1, 1], [], []>} : vector<8x32xf32>, vector<32x128xf32>, vector<8x128xf32> -> vector<8x128xf32>
    %226 = arith.addf %224, %225 : vector<8x128xf32>
    %227 = vector.extract_strided_slice %226 {offsets = [0, 0], sizes = [8, 96], strides = [1, 1]} : vector<8x128xf32> to vector<8x96xf32>
    %228 = arith.negf %227 : vector<8x96xf32>
    %229 = math.exp %228 : vector<8x96xf32>
    %cst_59 = arith.constant 1.000000e+00 : f32
    %230 = vector.broadcast %cst_59 : f32 to vector<8x96xf32>
    %231 = arith.addf %230, %229 : vector<8x96xf32>
    %232 = arith.divf %230, %231 : vector<8x96xf32>
    %233 = vector.extract_strided_slice %232 {offsets = [0, 0], sizes = [8, 32], strides = [1, 1]} : vector<8x96xf32> to vector<8x32xf32>
    %234 = vector.extract_strided_slice %232 {offsets = [0, 32], sizes = [8, 32], strides = [1, 1]} : vector<8x96xf32> to vector<8x32xf32>
    %235 = vector.extract_strided_slice %232 {offsets = [0, 64], sizes = [8, 32], strides = [1, 1]} : vector<8x96xf32> to vector<8x32xf32>
    %236 = vector.extract_strided_slice %226 {offsets = [0, 96], sizes = [8, 32], strides = [1, 1]} : vector<8x128xf32> to vector<8x32xf32>
    %237 = math.tanh %236 : vector<8x32xf32>
    %238 = arith.mulf %234, %218 : vector<8x32xf32>
    %239 = arith.mulf %233, %237 : vector<8x32xf32>
    %240 = arith.addf %238, %239 : vector<8x32xf32>
    %241 = math.tanh %240 : vector<8x32xf32>
    %242 = arith.mulf %235, %241 : vector<8x32xf32>
    %cst_60 = arith.constant 0.000000e+00 : f32
    %243 = vector.broadcast %cst_60 : f32 to vector<8x32xf32>
    %244 = arith.maximumf %242, %243 : vector<8x32xf32>
    %c16_61 = arith.constant 16 : index
    %c0_62 = arith.constant 0 : index
    %245 = vector.load %arg12[%c16_61, %c0_62] : memref<64x32xf32, #tpu.memory_space<vmem>>, vector<8x32xf32>
    tpu.vector_store %arg12[%c16_61, %c0_62], %244 {strides = array<i32>} : memref<64x32xf32, #tpu.memory_space<vmem>>, vector<8x32xf32>,
    %246 = vector.extract_strided_slice %177 {offsets = [24, 0], sizes = [8, 128], strides = [1, 1]} : vector<64x128xf32> to vector<8x128xf32>
    %cst_63 = arith.constant dense<0.000000e+00> : vector<8x128xf32>
    %247 = tpu.matmul %242, %173, %cst_63 {dimension_numbers = #tpu.dot_dimension_numbers<[1], [0], [0], [1], [0, 0, 1, 1], [], []>} : vector<8x32xf32>, vector<32x128xf32>, vector<8x128xf32> -> vector<8x128xf32>
    %248 = arith.addf %246, %247 : vector<8x128xf32>
    %249 = vector.extract_strided_slice %248 {offsets = [0, 0], sizes = [8, 96], strides = [1, 1]} : vector<8x128xf32> to vector<8x96xf32>
    %250 = arith.negf %249 : vector<8x96xf32>
    %251 = math.exp %250 : vector<8x96xf32>
    %cst_64 = arith.constant 1.000000e+00 : f32
    %252 = vector.broadcast %cst_64 : f32 to vector<8x96xf32>
    %253 = arith.addf %252, %251 : vector<8x96xf32>
    %254 = arith.divf %252, %253 : vector<8x96xf32>
    %255 = vector.extract_strided_slice %254 {offsets = [0, 0], sizes = [8, 32], strides = [1, 1]} : vector<8x96xf32> to vector<8x32xf32>
    %256 = vector.extract_strided_slice %254 {offsets = [0, 32], sizes = [8, 32], strides = [1, 1]} : vector<8x96xf32> to vector<8x32xf32>
    %257 = vector.extract_strided_slice %254 {offsets = [0, 64], sizes = [8, 32], strides = [1, 1]} : vector<8x96xf32> to vector<8x32xf32>
    %258 = vector.extract_strided_slice %248 {offsets = [0, 96], sizes = [8, 32], strides = [1, 1]} : vector<8x128xf32> to vector<8x32xf32>
    %259 = math.tanh %258 : vector<8x32xf32>
    %260 = arith.mulf %256, %240 : vector<8x32xf32>
    %261 = arith.mulf %255, %259 : vector<8x32xf32>
    %262 = arith.addf %260, %261 : vector<8x32xf32>
    %263 = math.tanh %262 : vector<8x32xf32>
    %264 = arith.mulf %257, %263 : vector<8x32xf32>
    %cst_65 = arith.constant 0.000000e+00 : f32
    %265 = vector.broadcast %cst_65 : f32 to vector<8x32xf32>
    %266 = arith.maximumf %264, %265 : vector<8x32xf32>
    %c24_66 = arith.constant 24 : index
    %c0_67 = arith.constant 0 : index
    %267 = vector.load %arg12[%c24_66, %c0_67] : memref<64x32xf32, #tpu.memory_space<vmem>>, vector<8x32xf32>
    tpu.vector_store %arg12[%c24_66, %c0_67], %266 {strides = array<i32>} : memref<64x32xf32, #tpu.memory_space<vmem>>, vector<8x32xf32>,
    %268 = vector.extract_strided_slice %177 {offsets = [32, 0], sizes = [8, 128], strides = [1, 1]} : vector<64x128xf32> to vector<8x128xf32>
    %cst_68 = arith.constant dense<0.000000e+00> : vector<8x128xf32>
    %269 = tpu.matmul %264, %173, %cst_68 {dimension_numbers = #tpu.dot_dimension_numbers<[1], [0], [0], [1], [0, 0, 1, 1], [], []>} : vector<8x32xf32>, vector<32x128xf32>, vector<8x128xf32> -> vector<8x128xf32>
    %270 = arith.addf %268, %269 : vector<8x128xf32>
    %271 = vector.extract_strided_slice %270 {offsets = [0, 0], sizes = [8, 96], strides = [1, 1]} : vector<8x128xf32> to vector<8x96xf32>
    %272 = arith.negf %271 : vector<8x96xf32>
    %273 = math.exp %272 : vector<8x96xf32>
    %cst_69 = arith.constant 1.000000e+00 : f32
    %274 = vector.broadcast %cst_69 : f32 to vector<8x96xf32>
    %275 = arith.addf %274, %273 : vector<8x96xf32>
    %276 = arith.divf %274, %275 : vector<8x96xf32>
    %277 = vector.extract_strided_slice %276 {offsets = [0, 0], sizes = [8, 32], strides = [1, 1]} : vector<8x96xf32> to vector<8x32xf32>
    %278 = vector.extract_strided_slice %276 {offsets = [0, 32], sizes = [8, 32], strides = [1, 1]} : vector<8x96xf32> to vector<8x32xf32>
    %279 = vector.extract_strided_slice %276 {offsets = [0, 64], sizes = [8, 32], strides = [1, 1]} : vector<8x96xf32> to vector<8x32xf32>
    %280 = vector.extract_strided_slice %270 {offsets = [0, 96], sizes = [8, 32], strides = [1, 1]} : vector<8x128xf32> to vector<8x32xf32>
    %281 = math.tanh %280 : vector<8x32xf32>
    %282 = arith.mulf %278, %262 : vector<8x32xf32>
    %283 = arith.mulf %277, %281 : vector<8x32xf32>
    %284 = arith.addf %282, %283 : vector<8x32xf32>
    %285 = math.tanh %284 : vector<8x32xf32>
    %286 = arith.mulf %279, %285 : vector<8x32xf32>
    %cst_70 = arith.constant 0.000000e+00 : f32
    %287 = vector.broadcast %cst_70 : f32 to vector<8x32xf32>
    %288 = arith.maximumf %286, %287 : vector<8x32xf32>
    %c32_71 = arith.constant 32 : index
    %c0_72 = arith.constant 0 : index
    %289 = vector.load %arg12[%c32_71, %c0_72] : memref<64x32xf32, #tpu.memory_space<vmem>>, vector<8x32xf32>
    tpu.vector_store %arg12[%c32_71, %c0_72], %288 {strides = array<i32>} : memref<64x32xf32, #tpu.memory_space<vmem>>, vector<8x32xf32>,
    %290 = vector.extract_strided_slice %177 {offsets = [40, 0], sizes = [8, 128], strides = [1, 1]} : vector<64x128xf32> to vector<8x128xf32>
    %cst_73 = arith.constant dense<0.000000e+00> : vector<8x128xf32>
    %291 = tpu.matmul %286, %173, %cst_73 {dimension_numbers = #tpu.dot_dimension_numbers<[1], [0], [0], [1], [0, 0, 1, 1], [], []>} : vector<8x32xf32>, vector<32x128xf32>, vector<8x128xf32> -> vector<8x128xf32>
    %292 = arith.addf %290, %291 : vector<8x128xf32>
    %293 = vector.extract_strided_slice %292 {offsets = [0, 0], sizes = [8, 96], strides = [1, 1]} : vector<8x128xf32> to vector<8x96xf32>
    %294 = arith.negf %293 : vector<8x96xf32>
    %295 = math.exp %294 : vector<8x96xf32>
    %cst_74 = arith.constant 1.000000e+00 : f32
    %296 = vector.broadcast %cst_74 : f32 to vector<8x96xf32>
    %297 = arith.addf %296, %295 : vector<8x96xf32>
    %298 = arith.divf %296, %297 : vector<8x96xf32>
    %299 = vector.extract_strided_slice %298 {offsets = [0, 0], sizes = [8, 32], strides = [1, 1]} : vector<8x96xf32> to vector<8x32xf32>
    %300 = vector.extract_strided_slice %298 {offsets = [0, 32], sizes = [8, 32], strides = [1, 1]} : vector<8x96xf32> to vector<8x32xf32>
    %301 = vector.extract_strided_slice %298 {offsets = [0, 64], sizes = [8, 32], strides = [1, 1]} : vector<8x96xf32> to vector<8x32xf32>
    %302 = vector.extract_strided_slice %292 {offsets = [0, 96], sizes = [8, 32], strides = [1, 1]} : vector<8x128xf32> to vector<8x32xf32>
    %303 = math.tanh %302 : vector<8x32xf32>
    %304 = arith.mulf %300, %284 : vector<8x32xf32>
    %305 = arith.mulf %299, %303 : vector<8x32xf32>
    %306 = arith.addf %304, %305 : vector<8x32xf32>
    %307 = math.tanh %306 : vector<8x32xf32>
    %308 = arith.mulf %301, %307 : vector<8x32xf32>
    %cst_75 = arith.constant 0.000000e+00 : f32
    %309 = vector.broadcast %cst_75 : f32 to vector<8x32xf32>
    %310 = arith.maximumf %308, %309 : vector<8x32xf32>
    %c40_76 = arith.constant 40 : index
    %c0_77 = arith.constant 0 : index
    %311 = vector.load %arg12[%c40_76, %c0_77] : memref<64x32xf32, #tpu.memory_space<vmem>>, vector<8x32xf32>
    tpu.vector_store %arg12[%c40_76, %c0_77], %310 {strides = array<i32>} : memref<64x32xf32, #tpu.memory_space<vmem>>, vector<8x32xf32>,
    %312 = vector.extract_strided_slice %177 {offsets = [48, 0], sizes = [8, 128], strides = [1, 1]} : vector<64x128xf32> to vector<8x128xf32>
    %cst_78 = arith.constant dense<0.000000e+00> : vector<8x128xf32>
    %313 = tpu.matmul %308, %173, %cst_78 {dimension_numbers = #tpu.dot_dimension_numbers<[1], [0], [0], [1], [0, 0, 1, 1], [], []>} : vector<8x32xf32>, vector<32x128xf32>, vector<8x128xf32> -> vector<8x128xf32>
    %314 = arith.addf %312, %313 : vector<8x128xf32>
    %315 = vector.extract_strided_slice %314 {offsets = [0, 0], sizes = [8, 96], strides = [1, 1]} : vector<8x128xf32> to vector<8x96xf32>
    %316 = arith.negf %315 : vector<8x96xf32>
    %317 = math.exp %316 : vector<8x96xf32>
    %cst_79 = arith.constant 1.000000e+00 : f32
    %318 = vector.broadcast %cst_79 : f32 to vector<8x96xf32>
    %319 = arith.addf %318, %317 : vector<8x96xf32>
    %320 = arith.divf %318, %319 : vector<8x96xf32>
    %321 = vector.extract_strided_slice %320 {offsets = [0, 0], sizes = [8, 32], strides = [1, 1]} : vector<8x96xf32> to vector<8x32xf32>
    %322 = vector.extract_strided_slice %320 {offsets = [0, 32], sizes = [8, 32], strides = [1, 1]} : vector<8x96xf32> to vector<8x32xf32>
    %323 = vector.extract_strided_slice %320 {offsets = [0, 64], sizes = [8, 32], strides = [1, 1]} : vector<8x96xf32> to vector<8x32xf32>
    %324 = vector.extract_strided_slice %314 {offsets = [0, 96], sizes = [8, 32], strides = [1, 1]} : vector<8x128xf32> to vector<8x32xf32>
    %325 = math.tanh %324 : vector<8x32xf32>
    %326 = arith.mulf %322, %306 : vector<8x32xf32>
    %327 = arith.mulf %321, %325 : vector<8x32xf32>
    %328 = arith.addf %326, %327 : vector<8x32xf32>
    %329 = math.tanh %328 : vector<8x32xf32>
    %330 = arith.mulf %323, %329 : vector<8x32xf32>
    %cst_80 = arith.constant 0.000000e+00 : f32
    %331 = vector.broadcast %cst_80 : f32 to vector<8x32xf32>
    %332 = arith.maximumf %330, %331 : vector<8x32xf32>
    %c48_81 = arith.constant 48 : index
    %c0_82 = arith.constant 0 : index
    %333 = vector.load %arg12[%c48_81, %c0_82] : memref<64x32xf32, #tpu.memory_space<vmem>>, vector<8x32xf32>
    tpu.vector_store %arg12[%c48_81, %c0_82], %332 {strides = array<i32>} : memref<64x32xf32, #tpu.memory_space<vmem>>, vector<8x32xf32>,
    %334 = vector.extract_strided_slice %177 {offsets = [56, 0], sizes = [8, 128], strides = [1, 1]} : vector<64x128xf32> to vector<8x128xf32>
    %cst_83 = arith.constant dense<0.000000e+00> : vector<8x128xf32>
    %335 = tpu.matmul %330, %173, %cst_83 {dimension_numbers = #tpu.dot_dimension_numbers<[1], [0], [0], [1], [0, 0, 1, 1], [], []>} : vector<8x32xf32>, vector<32x128xf32>, vector<8x128xf32> -> vector<8x128xf32>
    %336 = arith.addf %334, %335 : vector<8x128xf32>
    %337 = vector.extract_strided_slice %336 {offsets = [0, 0], sizes = [8, 96], strides = [1, 1]} : vector<8x128xf32> to vector<8x96xf32>
    %338 = arith.negf %337 : vector<8x96xf32>
    %339 = math.exp %338 : vector<8x96xf32>
    %cst_84 = arith.constant 1.000000e+00 : f32
    %340 = vector.broadcast %cst_84 : f32 to vector<8x96xf32>
    %341 = arith.addf %340, %339 : vector<8x96xf32>
    %342 = arith.divf %340, %341 : vector<8x96xf32>
    %343 = vector.extract_strided_slice %342 {offsets = [0, 0], sizes = [8, 32], strides = [1, 1]} : vector<8x96xf32> to vector<8x32xf32>
    %344 = vector.extract_strided_slice %342 {offsets = [0, 32], sizes = [8, 32], strides = [1, 1]} : vector<8x96xf32> to vector<8x32xf32>
    %345 = vector.extract_strided_slice %342 {offsets = [0, 64], sizes = [8, 32], strides = [1, 1]} : vector<8x96xf32> to vector<8x32xf32>
    %346 = vector.extract_strided_slice %336 {offsets = [0, 96], sizes = [8, 32], strides = [1, 1]} : vector<8x128xf32> to vector<8x32xf32>
    %347 = math.tanh %346 : vector<8x32xf32>
    %348 = arith.mulf %344, %328 : vector<8x32xf32>
    %349 = arith.mulf %343, %347 : vector<8x32xf32>
    %350 = arith.addf %348, %349 : vector<8x32xf32>
    %351 = math.tanh %350 : vector<8x32xf32>
    %352 = arith.mulf %345, %351 : vector<8x32xf32>
    %cst_85 = arith.constant 0.000000e+00 : f32
    %353 = vector.broadcast %cst_85 : f32 to vector<8x32xf32>
    %354 = arith.maximumf %352, %353 : vector<8x32xf32>
    %c56_86 = arith.constant 56 : index
    %c0_87 = arith.constant 0 : index
    %355 = vector.load %arg12[%c56_86, %c0_87] : memref<64x32xf32, #tpu.memory_space<vmem>>, vector<8x32xf32>
    tpu.vector_store %arg12[%c56_86, %c0_87], %354 {strides = array<i32>} : memref<64x32xf32, #tpu.memory_space<vmem>>, vector<8x32xf32>,
    %c0_88 = arith.constant 0 : index
    %c0_89 = arith.constant 0 : index
    %356 = vector.load %arg12[%c0_88, %c0_89] : memref<64x32xf32, #tpu.memory_space<vmem>>, vector<64x32xf32>
    %c0_90 = arith.constant 0 : index
    %c0_91 = arith.constant 0 : index
    %357 = vector.load %arg8[%c0_90, %c0_91] : memref<32x16xf32, #tpu.memory_space<vmem>>, vector<32x16xf32>
    %c0_92 = arith.constant 0 : index
    %c0_93 = arith.constant 0 : index
    %358 = vector.load %arg9[%c0_92, %c0_93] : memref<4x16xf32, #tpu.memory_space<vmem>>, vector<4x16xf32>
    %c0_94 = arith.constant 0 : index
    %c0_95 = arith.constant 0 : index
    %359 = vector.load %arg10[%c0_94, %c0_95] : memref<1x16xf32, #tpu.memory_space<vmem>>, vector<1x16xf32>
    %cst_96 = arith.constant dense<0.000000e+00> : vector<64x16xf32>
    %360 = tpu.matmul %356, %357, %cst_96 {dimension_numbers = #tpu.dot_dimension_numbers<[1], [0], [0], [1], [0, 0, 1, 1], [], []>} : vector<64x32xf32>, vector<32x16xf32>, vector<64x16xf32> -> vector<64x16xf32>
    %361 = vector.broadcast %359 : vector<1x16xf32> to vector<64x16xf32>
    %362 = arith.addf %360, %361 : vector<64x16xf32>
    %cst_97 = arith.constant 0.000000e+00 : f32
    %363 = vector.broadcast %cst_97 : f32 to vector<8x4xf32>
    %cst_98 = arith.constant 0.000000e+00 : f32
    %364 = vector.broadcast %cst_98 : f32 to vector<8x4xf32>
    %365 = vector.extract_strided_slice %362 {offsets = [0, 0], sizes = [8, 16], strides = [1, 1]} : vector<64x16xf32> to vector<8x16xf32>
    %cst_99 = arith.constant dense<0.000000e+00> : vector<8x16xf32>
    %366 = tpu.matmul %363, %358, %cst_99 {dimension_numbers = #tpu.dot_dimension_numbers<[1], [0], [0], [1], [0, 0, 1, 1], [], []>} : vector<8x4xf32>, vector<4x16xf32>, vector<8x16xf32> -> vector<8x16xf32>
    %367 = arith.addf %365, %366 : vector<8x16xf32>
    %368 = vector.extract_strided_slice %367 {offsets = [0, 0], sizes = [8, 12], strides = [1, 1]} : vector<8x16xf32> to vector<8x12xf32>
    %369 = arith.negf %368 : vector<8x12xf32>
    %370 = math.exp %369 : vector<8x12xf32>
    %cst_100 = arith.constant 1.000000e+00 : f32
    %371 = vector.broadcast %cst_100 : f32 to vector<8x12xf32>
    %372 = arith.addf %371, %370 : vector<8x12xf32>
    %373 = arith.divf %371, %372 : vector<8x12xf32>
    %374 = vector.extract_strided_slice %373 {offsets = [0, 0], sizes = [8, 4], strides = [1, 1]} : vector<8x12xf32> to vector<8x4xf32>
    %375 = vector.extract_strided_slice %373 {offsets = [0, 4], sizes = [8, 4], strides = [1, 1]} : vector<8x12xf32> to vector<8x4xf32>
    %376 = vector.extract_strided_slice %373 {offsets = [0, 8], sizes = [8, 4], strides = [1, 1]} : vector<8x12xf32> to vector<8x4xf32>
    %377 = vector.extract_strided_slice %367 {offsets = [0, 12], sizes = [8, 4], strides = [1, 1]} : vector<8x16xf32> to vector<8x4xf32>
    %378 = math.tanh %377 : vector<8x4xf32>
    %379 = arith.mulf %375, %364 : vector<8x4xf32>
    %380 = arith.mulf %374, %378 : vector<8x4xf32>
    %381 = arith.addf %379, %380 : vector<8x4xf32>
    %382 = math.tanh %381 : vector<8x4xf32>
    %383 = arith.mulf %376, %382 : vector<8x4xf32>
    %c1_i32 = arith.constant 1 : i32
    %384 = vector.broadcast %c1_i32 : i32 to vector<8x1xi32>
    %385 = arith.cmpi eq, %0, %384 : vector<8x1xi32>
    %386 = vector.shape_cast %385 : vector<8x1xi1> to vector<8x1xi1>
    %387 = vector.broadcast %386 : vector<8x1xi1> to vector<8x4xi1>
    %388 = arith.select %387, %383, %2 : vector<8x4xi1>, vector<8x4xf32>
    %389 = vector.extract_strided_slice %362 {offsets = [8, 0], sizes = [8, 16], strides = [1, 1]} : vector<64x16xf32> to vector<8x16xf32>
    %cst_101 = arith.constant dense<0.000000e+00> : vector<8x16xf32>
    %390 = tpu.matmul %383, %358, %cst_101 {dimension_numbers = #tpu.dot_dimension_numbers<[1], [0], [0], [1], [0, 0, 1, 1], [], []>} : vector<8x4xf32>, vector<4x16xf32>, vector<8x16xf32> -> vector<8x16xf32>
    %391 = arith.addf %389, %390 : vector<8x16xf32>
    %392 = vector.extract_strided_slice %391 {offsets = [0, 0], sizes = [8, 12], strides = [1, 1]} : vector<8x16xf32> to vector<8x12xf32>
    %393 = arith.negf %392 : vector<8x12xf32>
    %394 = math.exp %393 : vector<8x12xf32>
    %cst_102 = arith.constant 1.000000e+00 : f32
    %395 = vector.broadcast %cst_102 : f32 to vector<8x12xf32>
    %396 = arith.addf %395, %394 : vector<8x12xf32>
    %397 = arith.divf %395, %396 : vector<8x12xf32>
    %398 = vector.extract_strided_slice %397 {offsets = [0, 0], sizes = [8, 4], strides = [1, 1]} : vector<8x12xf32> to vector<8x4xf32>
    %399 = vector.extract_strided_slice %397 {offsets = [0, 4], sizes = [8, 4], strides = [1, 1]} : vector<8x12xf32> to vector<8x4xf32>
    %400 = vector.extract_strided_slice %397 {offsets = [0, 8], sizes = [8, 4], strides = [1, 1]} : vector<8x12xf32> to vector<8x4xf32>
    %401 = vector.extract_strided_slice %391 {offsets = [0, 12], sizes = [8, 4], strides = [1, 1]} : vector<8x16xf32> to vector<8x4xf32>
    %402 = math.tanh %401 : vector<8x4xf32>
    %403 = arith.mulf %399, %381 : vector<8x4xf32>
    %404 = arith.mulf %398, %402 : vector<8x4xf32>
    %405 = arith.addf %403, %404 : vector<8x4xf32>
    %406 = math.tanh %405 : vector<8x4xf32>
    %407 = arith.mulf %400, %406 : vector<8x4xf32>
    %c2_i32 = arith.constant 2 : i32
    %408 = vector.broadcast %c2_i32 : i32 to vector<8x1xi32>
    %409 = arith.cmpi eq, %0, %408 : vector<8x1xi32>
    %410 = vector.shape_cast %409 : vector<8x1xi1> to vector<8x1xi1>
    %411 = vector.broadcast %410 : vector<8x1xi1> to vector<8x4xi1>
    %412 = arith.select %411, %407, %388 : vector<8x4xi1>, vector<8x4xf32>
    %413 = vector.extract_strided_slice %362 {offsets = [16, 0], sizes = [8, 16], strides = [1, 1]} : vector<64x16xf32> to vector<8x16xf32>
    %cst_103 = arith.constant dense<0.000000e+00> : vector<8x16xf32>
    %414 = tpu.matmul %407, %358, %cst_103 {dimension_numbers = #tpu.dot_dimension_numbers<[1], [0], [0], [1], [0, 0, 1, 1], [], []>} : vector<8x4xf32>, vector<4x16xf32>, vector<8x16xf32> -> vector<8x16xf32>
    %415 = arith.addf %413, %414 : vector<8x16xf32>
    %416 = vector.extract_strided_slice %415 {offsets = [0, 0], sizes = [8, 12], strides = [1, 1]} : vector<8x16xf32> to vector<8x12xf32>
    %417 = arith.negf %416 : vector<8x12xf32>
    %418 = math.exp %417 : vector<8x12xf32>
    %cst_104 = arith.constant 1.000000e+00 : f32
    %419 = vector.broadcast %cst_104 : f32 to vector<8x12xf32>
    %420 = arith.addf %419, %418 : vector<8x12xf32>
    %421 = arith.divf %419, %420 : vector<8x12xf32>
    %422 = vector.extract_strided_slice %421 {offsets = [0, 0], sizes = [8, 4], strides = [1, 1]} : vector<8x12xf32> to vector<8x4xf32>
    %423 = vector.extract_strided_slice %421 {offsets = [0, 4], sizes = [8, 4], strides = [1, 1]} : vector<8x12xf32> to vector<8x4xf32>
    %424 = vector.extract_strided_slice %421 {offsets = [0, 8], sizes = [8, 4], strides = [1, 1]} : vector<8x12xf32> to vector<8x4xf32>
    %425 = vector.extract_strided_slice %415 {offsets = [0, 12], sizes = [8, 4], strides = [1, 1]} : vector<8x16xf32> to vector<8x4xf32>
    %426 = math.tanh %425 : vector<8x4xf32>
    %427 = arith.mulf %423, %405 : vector<8x4xf32>
    %428 = arith.mulf %422, %426 : vector<8x4xf32>
    %429 = arith.addf %427, %428 : vector<8x4xf32>
    %430 = math.tanh %429 : vector<8x4xf32>
    %431 = arith.mulf %424, %430 : vector<8x4xf32>
    %c3_i32 = arith.constant 3 : i32
    %432 = vector.broadcast %c3_i32 : i32 to vector<8x1xi32>
    %433 = arith.cmpi eq, %0, %432 : vector<8x1xi32>
    %434 = vector.shape_cast %433 : vector<8x1xi1> to vector<8x1xi1>
    %435 = vector.broadcast %434 : vector<8x1xi1> to vector<8x4xi1>
    %436 = arith.select %435, %431, %412 : vector<8x4xi1>, vector<8x4xf32>
    %437 = vector.extract_strided_slice %362 {offsets = [24, 0], sizes = [8, 16], strides = [1, 1]} : vector<64x16xf32> to vector<8x16xf32>
    %cst_105 = arith.constant dense<0.000000e+00> : vector<8x16xf32>
    %438 = tpu.matmul %431, %358, %cst_105 {dimension_numbers = #tpu.dot_dimension_numbers<[1], [0], [0], [1], [0, 0, 1, 1], [], []>} : vector<8x4xf32>, vector<4x16xf32>, vector<8x16xf32> -> vector<8x16xf32>
    %439 = arith.addf %437, %438 : vector<8x16xf32>
    %440 = vector.extract_strided_slice %439 {offsets = [0, 0], sizes = [8, 12], strides = [1, 1]} : vector<8x16xf32> to vector<8x12xf32>
    %441 = arith.negf %440 : vector<8x12xf32>
    %442 = math.exp %441 : vector<8x12xf32>
    %cst_106 = arith.constant 1.000000e+00 : f32
    %443 = vector.broadcast %cst_106 : f32 to vector<8x12xf32>
    %444 = arith.addf %443, %442 : vector<8x12xf32>
    %445 = arith.divf %443, %444 : vector<8x12xf32>
    %446 = vector.extract_strided_slice %445 {offsets = [0, 0], sizes = [8, 4], strides = [1, 1]} : vector<8x12xf32> to vector<8x4xf32>
    %447 = vector.extract_strided_slice %445 {offsets = [0, 4], sizes = [8, 4], strides = [1, 1]} : vector<8x12xf32> to vector<8x4xf32>
    %448 = vector.extract_strided_slice %445 {offsets = [0, 8], sizes = [8, 4], strides = [1, 1]} : vector<8x12xf32> to vector<8x4xf32>
    %449 = vector.extract_strided_slice %439 {offsets = [0, 12], sizes = [8, 4], strides = [1, 1]} : vector<8x16xf32> to vector<8x4xf32>
    %450 = math.tanh %449 : vector<8x4xf32>
    %451 = arith.mulf %447, %429 : vector<8x4xf32>
    %452 = arith.mulf %446, %450 : vector<8x4xf32>
    %453 = arith.addf %451, %452 : vector<8x4xf32>
    %454 = math.tanh %453 : vector<8x4xf32>
    %455 = arith.mulf %448, %454 : vector<8x4xf32>
    %c4_i32 = arith.constant 4 : i32
    %456 = vector.broadcast %c4_i32 : i32 to vector<8x1xi32>
    %457 = arith.cmpi eq, %0, %456 : vector<8x1xi32>
    %458 = vector.shape_cast %457 : vector<8x1xi1> to vector<8x1xi1>
    %459 = vector.broadcast %458 : vector<8x1xi1> to vector<8x4xi1>
    %460 = arith.select %459, %455, %436 : vector<8x4xi1>, vector<8x4xf32>
    %461 = vector.extract_strided_slice %362 {offsets = [32, 0], sizes = [8, 16], strides = [1, 1]} : vector<64x16xf32> to vector<8x16xf32>
    %cst_107 = arith.constant dense<0.000000e+00> : vector<8x16xf32>
    %462 = tpu.matmul %455, %358, %cst_107 {dimension_numbers = #tpu.dot_dimension_numbers<[1], [0], [0], [1], [0, 0, 1, 1], [], []>} : vector<8x4xf32>, vector<4x16xf32>, vector<8x16xf32> -> vector<8x16xf32>
    %463 = arith.addf %461, %462 : vector<8x16xf32>
    %464 = vector.extract_strided_slice %463 {offsets = [0, 0], sizes = [8, 12], strides = [1, 1]} : vector<8x16xf32> to vector<8x12xf32>
    %465 = arith.negf %464 : vector<8x12xf32>
    %466 = math.exp %465 : vector<8x12xf32>
    %cst_108 = arith.constant 1.000000e+00 : f32
    %467 = vector.broadcast %cst_108 : f32 to vector<8x12xf32>
    %468 = arith.addf %467, %466 : vector<8x12xf32>
    %469 = arith.divf %467, %468 : vector<8x12xf32>
    %470 = vector.extract_strided_slice %469 {offsets = [0, 0], sizes = [8, 4], strides = [1, 1]} : vector<8x12xf32> to vector<8x4xf32>
    %471 = vector.extract_strided_slice %469 {offsets = [0, 4], sizes = [8, 4], strides = [1, 1]} : vector<8x12xf32> to vector<8x4xf32>
    %472 = vector.extract_strided_slice %469 {offsets = [0, 8], sizes = [8, 4], strides = [1, 1]} : vector<8x12xf32> to vector<8x4xf32>
    %473 = vector.extract_strided_slice %463 {offsets = [0, 12], sizes = [8, 4], strides = [1, 1]} : vector<8x16xf32> to vector<8x4xf32>
    %474 = math.tanh %473 : vector<8x4xf32>
    %475 = arith.mulf %471, %453 : vector<8x4xf32>
    %476 = arith.mulf %470, %474 : vector<8x4xf32>
    %477 = arith.addf %475, %476 : vector<8x4xf32>
    %478 = math.tanh %477 : vector<8x4xf32>
    %479 = arith.mulf %472, %478 : vector<8x4xf32>
    %c5_i32 = arith.constant 5 : i32
    %480 = vector.broadcast %c5_i32 : i32 to vector<8x1xi32>
    %481 = arith.cmpi eq, %0, %480 : vector<8x1xi32>
    %482 = vector.shape_cast %481 : vector<8x1xi1> to vector<8x1xi1>
    %483 = vector.broadcast %482 : vector<8x1xi1> to vector<8x4xi1>
    %484 = arith.select %483, %479, %460 : vector<8x4xi1>, vector<8x4xf32>
    %485 = vector.extract_strided_slice %362 {offsets = [40, 0], sizes = [8, 16], strides = [1, 1]} : vector<64x16xf32> to vector<8x16xf32>
    %cst_109 = arith.constant dense<0.000000e+00> : vector<8x16xf32>
    %486 = tpu.matmul %479, %358, %cst_109 {dimension_numbers = #tpu.dot_dimension_numbers<[1], [0], [0], [1], [0, 0, 1, 1], [], []>} : vector<8x4xf32>, vector<4x16xf32>, vector<8x16xf32> -> vector<8x16xf32>
    %487 = arith.addf %485, %486 : vector<8x16xf32>
    %488 = vector.extract_strided_slice %487 {offsets = [0, 0], sizes = [8, 12], strides = [1, 1]} : vector<8x16xf32> to vector<8x12xf32>
    %489 = arith.negf %488 : vector<8x12xf32>
    %490 = math.exp %489 : vector<8x12xf32>
    %cst_110 = arith.constant 1.000000e+00 : f32
    %491 = vector.broadcast %cst_110 : f32 to vector<8x12xf32>
    %492 = arith.addf %491, %490 : vector<8x12xf32>
    %493 = arith.divf %491, %492 : vector<8x12xf32>
    %494 = vector.extract_strided_slice %493 {offsets = [0, 0], sizes = [8, 4], strides = [1, 1]} : vector<8x12xf32> to vector<8x4xf32>
    %495 = vector.extract_strided_slice %493 {offsets = [0, 4], sizes = [8, 4], strides = [1, 1]} : vector<8x12xf32> to vector<8x4xf32>
    %496 = vector.extract_strided_slice %493 {offsets = [0, 8], sizes = [8, 4], strides = [1, 1]} : vector<8x12xf32> to vector<8x4xf32>
    %497 = vector.extract_strided_slice %487 {offsets = [0, 12], sizes = [8, 4], strides = [1, 1]} : vector<8x16xf32> to vector<8x4xf32>
    %498 = math.tanh %497 : vector<8x4xf32>
    %499 = arith.mulf %495, %477 : vector<8x4xf32>
    %500 = arith.mulf %494, %498 : vector<8x4xf32>
    %501 = arith.addf %499, %500 : vector<8x4xf32>
    %502 = math.tanh %501 : vector<8x4xf32>
    %503 = arith.mulf %496, %502 : vector<8x4xf32>
    %c6_i32 = arith.constant 6 : i32
    %504 = vector.broadcast %c6_i32 : i32 to vector<8x1xi32>
    %505 = arith.cmpi eq, %0, %504 : vector<8x1xi32>
    %506 = vector.shape_cast %505 : vector<8x1xi1> to vector<8x1xi1>
    %507 = vector.broadcast %506 : vector<8x1xi1> to vector<8x4xi1>
    %508 = arith.select %507, %503, %484 : vector<8x4xi1>, vector<8x4xf32>
    %509 = vector.extract_strided_slice %362 {offsets = [48, 0], sizes = [8, 16], strides = [1, 1]} : vector<64x16xf32> to vector<8x16xf32>
    %cst_111 = arith.constant dense<0.000000e+00> : vector<8x16xf32>
    %510 = tpu.matmul %503, %358, %cst_111 {dimension_numbers = #tpu.dot_dimension_numbers<[1], [0], [0], [1], [0, 0, 1, 1], [], []>} : vector<8x4xf32>, vector<4x16xf32>, vector<8x16xf32> -> vector<8x16xf32>
    %511 = arith.addf %509, %510 : vector<8x16xf32>
    %512 = vector.extract_strided_slice %511 {offsets = [0, 0], sizes = [8, 12], strides = [1, 1]} : vector<8x16xf32> to vector<8x12xf32>
    %513 = arith.negf %512 : vector<8x12xf32>
    %514 = math.exp %513 : vector<8x12xf32>
    %cst_112 = arith.constant 1.000000e+00 : f32
    %515 = vector.broadcast %cst_112 : f32 to vector<8x12xf32>
    %516 = arith.addf %515, %514 : vector<8x12xf32>
    %517 = arith.divf %515, %516 : vector<8x12xf32>
    %518 = vector.extract_strided_slice %517 {offsets = [0, 0], sizes = [8, 4], strides = [1, 1]} : vector<8x12xf32> to vector<8x4xf32>
    %519 = vector.extract_strided_slice %517 {offsets = [0, 4], sizes = [8, 4], strides = [1, 1]} : vector<8x12xf32> to vector<8x4xf32>
    %520 = vector.extract_strided_slice %517 {offsets = [0, 8], sizes = [8, 4], strides = [1, 1]} : vector<8x12xf32> to vector<8x4xf32>
    %521 = vector.extract_strided_slice %511 {offsets = [0, 12], sizes = [8, 4], strides = [1, 1]} : vector<8x16xf32> to vector<8x4xf32>
    %522 = math.tanh %521 : vector<8x4xf32>
    %523 = arith.mulf %519, %501 : vector<8x4xf32>
    %524 = arith.mulf %518, %522 : vector<8x4xf32>
    %525 = arith.addf %523, %524 : vector<8x4xf32>
    %526 = math.tanh %525 : vector<8x4xf32>
    %527 = arith.mulf %520, %526 : vector<8x4xf32>
    %c7_i32 = arith.constant 7 : i32
    %528 = vector.broadcast %c7_i32 : i32 to vector<8x1xi32>
    %529 = arith.cmpi eq, %0, %528 : vector<8x1xi32>
    %530 = vector.shape_cast %529 : vector<8x1xi1> to vector<8x1xi1>
    %531 = vector.broadcast %530 : vector<8x1xi1> to vector<8x4xi1>
    %532 = arith.select %531, %527, %508 : vector<8x4xi1>, vector<8x4xf32>
    %533 = vector.extract_strided_slice %362 {offsets = [56, 0], sizes = [8, 16], strides = [1, 1]} : vector<64x16xf32> to vector<8x16xf32>
    %cst_113 = arith.constant dense<0.000000e+00> : vector<8x16xf32>
    %534 = tpu.matmul %527, %358, %cst_113 {dimension_numbers = #tpu.dot_dimension_numbers<[1], [0], [0], [1], [0, 0, 1, 1], [], []>} : vector<8x4xf32>, vector<4x16xf32>, vector<8x16xf32> -> vector<8x16xf32>
    %535 = arith.addf %533, %534 : vector<8x16xf32>
    %536 = vector.extract_strided_slice %535 {offsets = [0, 0], sizes = [8, 12], strides = [1, 1]} : vector<8x16xf32> to vector<8x12xf32>
    %537 = arith.negf %536 : vector<8x12xf32>
    %538 = math.exp %537 : vector<8x12xf32>
    %cst_114 = arith.constant 1.000000e+00 : f32
    %539 = vector.broadcast %cst_114 : f32 to vector<8x12xf32>
    %540 = arith.addf %539, %538 : vector<8x12xf32>
    %541 = arith.divf %539, %540 : vector<8x12xf32>
    %542 = vector.extract_strided_slice %541 {offsets = [0, 0], sizes = [8, 4], strides = [1, 1]} : vector<8x12xf32> to vector<8x4xf32>
    %543 = vector.extract_strided_slice %541 {offsets = [0, 4], sizes = [8, 4], strides = [1, 1]} : vector<8x12xf32> to vector<8x4xf32>
    %544 = vector.extract_strided_slice %541 {offsets = [0, 8], sizes = [8, 4], strides = [1, 1]} : vector<8x12xf32> to vector<8x4xf32>
    %545 = vector.extract_strided_slice %535 {offsets = [0, 12], sizes = [8, 4], strides = [1, 1]} : vector<8x16xf32> to vector<8x4xf32>
    %546 = math.tanh %545 : vector<8x4xf32>
    %547 = arith.mulf %543, %525 : vector<8x4xf32>
    %548 = arith.mulf %542, %546 : vector<8x4xf32>
    %549 = arith.addf %547, %548 : vector<8x4xf32>
    %550 = math.tanh %549 : vector<8x4xf32>
    %551 = arith.mulf %544, %550 : vector<8x4xf32>
    %c8_i32 = arith.constant 8 : i32
    %552 = vector.broadcast %c8_i32 : i32 to vector<8x1xi32>
    %553 = arith.cmpi eq, %0, %552 : vector<8x1xi32>
    %554 = vector.shape_cast %553 : vector<8x1xi1> to vector<8x1xi1>
    %555 = vector.broadcast %554 : vector<8x1xi1> to vector<8x4xi1>
    %556 = arith.select %555, %551, %532 : vector<8x4xi1>, vector<8x4xf32>
    %cst_115 = arith.constant dense<0xFF800000> : vector<8xf32>
    %557 = vector.multi_reduction <maximumf>, %556, %cst_115 [1] : vector<8x4xf32> to vector<8xf32>
    %558 = vector.shape_cast %557 : vector<8xf32> to vector<8x1xf32>
    %559 = vector.broadcast %558 : vector<8x1xf32> to vector<8x4xf32>
    %560 = arith.subf %556, %559 : vector<8x4xf32>
    %561 = math.exp %560 : vector<8x4xf32>
    %cst_116 = arith.constant dense<0.000000e+00> : vector<8xf32>
    %562 = vector.multi_reduction <add>, %561, %cst_116 [1] : vector<8x4xf32> to vector<8xf32>
    %563 = vector.shape_cast %562 : vector<8xf32> to vector<8x1xf32>
    %564 = vector.broadcast %563 : vector<8x1xf32> to vector<8x4xf32>
    %565 = arith.divf %561, %564 : vector<8x4xf32>
    %c0_117 = arith.constant 0 : index
    %c0_118 = arith.constant 0 : index
    %566 = vector.load %arg11[%c0_117, %c0_118] : memref<8x4xf32, #tpu.memory_space<vmem>>, vector<8x4xf32>
    tpu.vector_store %arg11[%c0_117, %c0_118], %565 {strides = array<i32>} : memref<8x4xf32, #tpu.memory_space<vmem>>, vector<8x4xf32>,
    return
  }
}

</mosaic_0001>

<bundles_post_ra>
// kernel: baseline1_forward.1
= control target key start
LH: loop header
LB: loop body
LE: loop exit
PB: predicated region body
PF: predicated region fallthrough
CT: control target
= control target key end

     0   :  { %vm59_vm0 = vcmask 64512   ;;  %v3832_v0 = vmov 0.0|0.0   ;;  %vm3833_vm1 = vmmov 0   ;;  %v3834_v4 = vmov 0.0   ;;  %s3835_s12 = smov 32   ;;  %s3837_s28 = smov 116   ;;  %s4444_s3 = inlined_call_operand.vmem [shape: f32[32,128], index: 3, kind: input, shape index: {}]   ;;  %s4445_s2 = inlined_call_operand.vmem [shape: f32[8,128], index: 2, kind: input, shape index: {}]   ;;  %s4446_s1 = inlined_call_operand.vmem [shape: f32[64,8], index: 1, kind: input, shape index: {}]   ;;  %s4447_s4 = inlined_call_operand.vmem [shape: f32[1,128], index: 4, kind: input, shape index: {}]   ;;  %s4448_s5 = inlined_call_operand.vmem [shape: f32[32,128], index: 5, kind: input, shape index: {}]   ;;  %s4449_s6 = inlined_call_operand.vmem [shape: f32[32,128], index: 6, kind: input, shape index: {}]   ;;  %s4450_s7 = inlined_call_operand.vmem [shape: f32[1,128], index: 7, kind: input, shape index: {}]   ;;  %s4451_s8 = inlined_call_operand.vmem [shape: f32[32,16], index: 8, kind: input, shape index: {}]   ;;  %s4452_s9 = inlined_call_operand.vmem [shape: f32[4,16], index: 9, kind: input, shape index: {}]   ;;  %s4453_s10 = inlined_call_operand.vmem [shape: f32[1,16], index: 10, kind: input, shape index: {}]   ;;  %s4454_s0 = inlined_call_operand.vmem [shape: s32[8,1], index: 0, kind: input, shape index: {}]   ;;  %s4455_s11 = inlined_call_operand.vmem [shape: f32[8,4], index: 11, kind: output, shape index: {}]  }
   0x1   :  { %3513 = vmatprep.subr.bf16.mxu1 %v3832_v0  ;;  %v48_v1 = vld [vmem:[%s4444_s3] sm:$0xff]  ;;  %v49_v2 = vld [vmem:[%s4444_s3 + $0x8] sm:$0xff]  ;;  %3265 = vmatprep.mubr.msk.f32.mxu1 %vm3833_vm1, %v3834_v4  ;;  %v50_v8 = vld [vmem:[%s4444_s3 + $0x10] sm:$0xff]  ;;  %vm189_vm2 = vcmask 261120   ;;  %vm2154_vm3 = vcmask 1043456   ;;  %vm2151_vm4 = vcmask 31744  }
   0x2   :  { %v47_v3 = vld [vmem:[%s4445_s2] sm:$0xff]  ;;  %v3913_v5 = vpack.c.bf16 %v49_v2, %v48_v1  ;;  %v40_v7 = vld [vmem:[%s4446_s1 + $0x8] sm:$0xff]  ;;  %v51_v9 = vld [vmem:[%s4444_s3 + $0x18] sm:$0xff]  ;;  %s3839_s2 = smov 120  }
   0x3   :  { %3243 = vmatprep.subr.mxu0 %v47_v3  ;;  %v39_v6 = vld [vmem:[%s4446_s1] sm:$0xff]  ;;  %v3930_v10 = vpack.c.bf16 %v51_v9, %v50_v8  ;;  %v41_v46 = vld [vmem:[%s4446_s1 + $0x10] sm:$0xff]  ;;  %v42_v47 = vld [vmem:[%s4446_s1 + $0x18] sm:$0xff] }
   0x4   :  { %3244 = vmatpush3.msra.mxu0 %v47_v3  ;;  %3245 = vmatprep.mubr.msk.f32.mxu0 %vm59_vm0, %v39_v6  ;;  %v3950_v12 = vld [vmem:[%s4447_s4] ss:$0 sm:$0xff]  ;;  %s3836_s4 = smov 64   ;;  %v44_v49 = vld [vmem:[%s4446_s1 + $0x28] sm:$0xff]  ;;  %v45_v50 = vld [vmem:[%s4446_s1 + $0x30] sm:$0xff] }
   0x5   :  { %3515 = vmatpush3.bf16.msra.mxu1 %v3913_v5  ;;  %3246 = vmatmul.mubr.msk.f32.vlgmr.msra.gmra.mrb[0].mxu0 %vm59_vm0, %v40_v7  ;;  %v43_v48 = vld [vmem:[%s4446_s1 + $0x20] sm:$0xff]  ;;  %v46_v51 = vld [vmem:[%s4446_s1 + $0x38] sm:$0xff] }
   0x6   :  { %3516 = vmatprep.subr.bf16.mxu1 %v3832_v0  ;;  %3525 = vmatprep.subr.bf16.mxu0 %v3832_v0 }
   0x7   :  { %3527 = vmatpush3.bf16.msra.mxu0 %v3913_v5  ;;  %3248 = vmatprep.mubr.msk.f32.mxu0 %vm59_vm0, %v41_v46 }
   0x8   :  { %3528 = vmatprep.subr.bf16.mxu0 %v3832_v0 }
   0x9   :  { %3518 = vmatpush3.bf16.msra.mxu1 %v3930_v10  ;;  %3249 = vmatmul.mubr.msk.f32.gmra.mrb[2].mxu0 %vm59_vm0, %v42_v47 }
   0xa   :  { %3519 = vmatprep.subr.bf16.mxu1 %v3832_v0  ;;  %3251 = vmatprep.mubr.msk.f32.mxu0 %vm59_vm0, %v43_v48 }
   0xb   :  { %3530 = vmatpush3.bf16.msra.mxu0 %v3930_v10 }
   0xc   :  { %3266 = vmatmul.mubr.f32.vlgmr.msra.gmra.mrb[0].mxu1 %v3834_v4  ;;  %3537 = vmatprep.subr.bf16.mxu0 %v3832_v0 }
   0xd   :  { %3521 = vmatpush3.bf16.msra.mxu1 %v3913_v5  ;;  %3276 = vmatprep.mubr.msk.f32.mxu1 %vm3833_vm1, %v3834_v4 }
   0xe   :  { %3522 = vmatprep.subr.bf16.mxu1 %v3832_v0  ;;  %3252 = vmatmul.mubr.msk.f32.gmra.mrb[4].mxu0 %vm59_vm0, %v44_v49 }
   0xf   :  { %3254 = vmatprep.mubr.msk.f32.mxu0 %vm59_vm0, %v45_v50 }
  0x11   :  { %3524 = vmatpush3.bf16.msra.mxu1 %v3930_v10 }
  0x12   :  { %3531 = vmatprep.subr.bf16.mxu1 %v3832_v0  ;;  %3255 = vmatmul.mubr.msk.f32.gmra.mrb[6].mxu0 %vm59_vm0, %v46_v51 }
  0x13   :  { %3287 = vmatprep.mubr.msk.f32.mxu0 %vm3833_vm1, %v3834_v4 }
  0xd8   :  { %v3247_v11 = vpop.f32.mrb[0].mxu0 }
  0xd9   :  { %v150_v13 = vpop.f32.mrb[1].mxu0  ;;  %v156_v32 = vadd.f32 %v3247_v11, %v3950_v12 }
  0xda   :  { %v151_v14 = vadd.f32 %v3950_v12, %v150_v13 }
  0xdc   :  { %v3250_v55 = vpop.f32.mrb[2].mxu0 }
  0xdd   :  { %v160_v56 = vpop.f32.mrb[3].mxu0 }
  0xde   :  { %v161_v62 = vadd.f32 %v3950_v12, %v160_v56 }
  0xdf   :  { %v259_v15 = vpop.f32.mrb[0].mxu1 }
  0xe0   :  { %v263_v16 = vadd.f32 %v259_v15, %v151_v14  ;;  %v3267_v17 = vpop.f32.mrb[1].mxu1 }
  0xe1   :  { %v3996_v57 = vpop.f32.mrb[4].mxu0 }
  0xe2   :  { %3636 = vtanh.f32 %v263_v16  ;;  %v3043_v19 = vmul.f32 -1.442695, %v263_v16  ;;  %v3998_v58 = vpop.f32.mrb[5].mxu0 }
  0xe4   :  { %3638 = vpow2.f32 %v3043_v19 }
  0xe5   :  { %v4000_v59 = vpop.f32.mrb[6].mxu0 }
  0xe6   :  { %v4002_v60 = vpop.f32.mrb[7].mxu0 }
  0xec   :  { %v3637_v18 = vpop.eup %3636 }
  0xed   :  { %273 = vrot.lane.b32.xlu0 %v3637_v18, %s3835_s12 }
  0xee   :  { %v3639_v20 = vpop.eup %3638 }
  0xef   :  { %v267_v21 = vadd.f32 1.0, %v3639_v20 }
  0xf1   :  { %3640 = vrcp.f32 %v267_v21  ;;  %v166_v21 = vadd.f32 %v3250_v55, %v3950_v12 }
  0xfb   :  { %v3641_v22 = vpop.eup %3640 }
  0xfc   :  { %v271_v25 = vmul.f32 0.0, %v3641_v22 }
 0x15f   :  { %v274_v23 = vpop.permute.xlu0 %273 }
 0x160   :  { %v276_v24 = vmul.f32 %v3641_v22, %v274_v23 }
 0x162   :  { %278 = vrot.lane.b32.xlu0 %v276_v24, %s3835_s12 }
 0x1d4   :  { %v279_v26 = vpop.permute.xlu0 %278 }
 0x1d5   :  { %v281_v27 = vadd.f32 %v279_v26, %v271_v25 }
 0x1d7   :  { %3642 = vtanh.f32 %v281_v27 }
 0x1e1   :  { %v3643_v28 = vpop.eup %3642 }
 0x1e2   :  { %284 = vrot.lane.b32.xlu1 %v3643_v28, %s3835_s12 }
 0x254   :  { %v285_v29 = vpop.permute.xlu1 %284 }
 0x255   :  { %v287_v30 = vmul.f32 %v3641_v22, %v285_v29 }
 0x257   :  { %289 = vrot.lane.b32.xlu1 %v287_v30, %s3836_s4 }
 0x2c9   :  { %v290_v31 = vpop.permute.xlu1 %289 }
 0x2ca   :  { %292 = vst.msk [vmem:[#allocation2] sm:$0xff] %vm189_vm2, %v290_v31  ;;  %3277 = vmatmul.mubr.msk.f32.vlgmr.msra.gmra.mrb[2].mxu1 %vm189_vm2, %v290_v31 }
 0x2cb   :  { %3533 = vmatpush3.bf16.msra.mxu1 %v3913_v5  ;;  %3298 = vmatprep.mubr.msk.f32.mxu1 %vm3833_vm1, %v3834_v4 }
 0x2cc   :  { %3534 = vmatprep.subr.bf16.mxu1 %v3832_v0 }
 0x2cf   :  { %3536 = vmatpush3.bf16.msra.mxu1 %v3930_v10 }
 0x2d0   :  { %3543 = vmatprep.subr.bf16.mxu1 %v3832_v0 }
 0x39d   :  { %v361_v33 = vpop.f32.mrb[2].mxu1 }
 0x39e   :  { %v365_v34 = vadd.f32 %v361_v33, %v156_v32  ;;  %v3278_v35 = vpop.f32.mrb[3].mxu1 }
 0x3a0   :  { %3644 = vtanh.f32 %v365_v34  ;;  %v3045_v37 = vmul.f32 -1.442695, %v365_v34 }
 0x3a2   :  { %3646 = vpow2.f32 %v3045_v37 }
 0x3aa   :  { %v3645_v36 = vpop.eup %3644 }
 0x3ab   :  { %375 = vrot.lane.b32.xlu0 %v3645_v36, %s3835_s12 }
 0x3ac   :  { %v3647_v38 = vpop.eup %3646 }
 0x3ad   :  { %v369_v39 = vadd.f32 1.0, %v3647_v38 }
 0x3af   :  { %3648 = vrcp.f32 %v369_v39  ;;  %v171_v39 = vadd.f32 %v3950_v12, %v3998_v58  ;;  %v176_v58 = vadd.f32 %v3996_v57, %v3950_v12 }
 0x3b9   :  { %v3649_v40 = vpop.eup %3648 }
 0x3ba   :  { %v373_v43 = vmul.f32 %v3649_v40, %v281_v27 }
 0x41d   :  { %v376_v41 = vpop.permute.xlu0 %375 }
 0x41e   :  { %v378_v42 = vmul.f32 %v3649_v40, %v376_v41 }
 0x420   :  { %380 = vrot.lane.b32.xlu1 %v378_v42, %s3835_s12 }
 0x492   :  { %v381_v44 = vpop.permute.xlu1 %380 }
 0x493   :  { %v383_v45 = vadd.f32 %v381_v44, %v373_v43 }
 0x495   :  { %3650 = vtanh.f32 %v383_v45 }
 0x49f   :  { %v3651_v52 = vpop.eup %3650 }
 0x4a0   :  { %386 = vrot.lane.b32.xlu0 %v3651_v52, %s3835_s12 }
 0x512   :  { %v387_v53 = vpop.permute.xlu0 %386 }
 0x513   :  { %v389_v54 = vmul.f32 %v3649_v40, %v387_v53 }
 0x515   :  { %391 = vrot.lane.b32.xlu1 %v389_v54, %s3836_s4 }
 0x587   :  { %v392_v61 = vpop.permute.xlu1 %391 }
 0x588   :  { %394 = vst.msk [vmem:[#allocation2 + $0x8] sm:$0xff] %vm189_vm2, %v392_v61  ;;  %3288 = vmatmul.mubr.msk.f32.vlgmr.msra.gmra.mrb[8].mxu0 %vm189_vm2, %v392_v61 }
 0x589   :  { %3539 = vmatpush3.bf16.msra.mxu0 %v3913_v5  ;;  %3309 = vmatprep.mubr.msk.f32.mxu0 %vm3833_vm1, %v3834_v4 }
 0x58a   :  { %3540 = vmatprep.subr.bf16.mxu0 %v3832_v0 }
 0x58d   :  { %3542 = vmatpush3.bf16.msra.mxu0 %v3930_v10 }
 0x58e   :  { %3549 = vmatprep.subr.bf16.mxu0 %v3832_v0 }
 0x65b   :  { %v463_v63 = vpop.f32.mrb[8].mxu0 }
 0x65c   :  { %v467_v1 = vadd.f32 %v463_v63, %v161_v62  ;;  %v3289_v2 = vpop.f32.mrb[9].mxu0 }
 0x65e   :  { %3652 = vtanh.f32 %v467_v1  ;;  %v3047_v6 = vmul.f32 -1.442695, %v467_v1 }
 0x660   :  { %3654 = vpow2.f32 %v3047_v6 }
 0x668   :  { %v3653_v3 = vpop.eup %3652 }
 0x669   :  { %477 = vrot.lane.b32.xlu0 %v3653_v3, %s3835_s12 }
 0x66a   :  { %v3655_v7 = vpop.eup %3654 }
 0x66b   :  { %v471_v8 = vadd.f32 1.0, %v3655_v7 }
 0x66d   :  { %3656 = vrcp.f32 %v471_v8 }
 0x677   :  { %v3657_v9 = vpop.eup %3656 }
 0x678   :  { %v475_v14 = vmul.f32 %v3657_v9, %v383_v45 }
 0x6db   :  { %v478_v11 = vpop.permute.xlu0 %477 }
 0x6dc   :  { %v480_v13 = vmul.f32 %v3657_v9, %v478_v11  ;;  %v1015_v11 = vld [vmem:[%s4448_s5] sm:$0xff] }
 0x6de   :  { %482 = vrot.lane.b32.xlu1 %v480_v13, %s3835_s12  ;;  %v1016_v13 = vld [vmem:[%s4448_s5 + $0x8] sm:$0xff] }
 0x750   :  { %v483_v15 = vpop.permute.xlu1 %482 }
 0x751   :  { %v485_v16 = vadd.f32 %v483_v15, %v475_v14  ;;  %v3561_v14 = vpack.c.bf16 %v1016_v13, %v1015_v11 }
 0x753   :  { %3658 = vtanh.f32 %v485_v16 }
 0x75d   :  { %v3659_v17 = vpop.eup %3658 }
 0x75e   :  { %488 = vrot.lane.b32.xlu0 %v3659_v17, %s3835_s12 }
 0x7d0   :  { %v489_v18 = vpop.permute.xlu0 %488 }
 0x7d1   :  { %v491_v19 = vmul.f32 %v3657_v9, %v489_v18  ;;  %v1017_v18 = vld [vmem:[%s4448_s5 + $0x10] sm:$0xff] }
 0x7d3   :  { %493 = vrot.lane.b32.xlu1 %v491_v19, %s3836_s4  ;;  %v1018_v19 = vld [vmem:[%s4448_s5 + $0x18] sm:$0xff] }
 0x845   :  { %v494_v20 = vpop.permute.xlu1 %493 }
 0x846   :  { %496 = vst.msk [vmem:[#allocation2 + $0x10] sm:$0xff] %vm189_vm2, %v494_v20  ;;  %3299 = vmatmul.mubr.msk.f32.vlgmr.msra.gmra.mrb[4].mxu1 %vm189_vm2, %v494_v20  ;;  %v3565_v20 = vpack.c.bf16 %v1018_v19, %v1017_v18 }
 0x847   :  { %3545 = vmatpush3.bf16.msra.mxu1 %v3913_v5  ;;  %3320 = vmatprep.mubr.msk.f32.mxu1 %vm3833_vm1, %v3834_v4 }
 0x848   :  { %3546 = vmatprep.subr.bf16.mxu1 %v3832_v0 }
 0x84b   :  { %3548 = vmatpush3.bf16.msra.mxu1 %v3930_v10 }
 0x84c   :  { %3555 = vmatprep.subr.bf16.mxu1 %v3832_v0 }
 0x919   :  { %v565_v22 = vpop.f32.mrb[4].mxu1 }
 0x91a   :  { %v569_v23 = vadd.f32 %v565_v22, %v166_v21  ;;  %v3300_v24 = vpop.f32.mrb[5].mxu1  ;;  %v1007_v22 = vld [vmem:[#allocation2] sm:$0xff] }
 0x91b   :  { %v1009_v24 = vld [vmem:[#allocation2 + $0x10] sm:$0xff] }
 0x91c   :  { %3660 = vtanh.f32 %v569_v23  ;;  %v3049_v26 = vmul.f32 -1.442695, %v569_v23  ;;  %v1008_v23 = vld [vmem:[#allocation2 + $0x8] sm:$0xff] }
 0x91e   :  { %3662 = vpow2.f32 %v3049_v26 }
 0x926   :  { %v3661_v25 = vpop.eup %3660 }
 0x927   :  { %579 = vrot.lane.b32.xlu0 %v3661_v25, %s3835_s12 }
 0x928   :  { %v3663_v27 = vpop.eup %3662 }
 0x929   :  { %v573_v28 = vadd.f32 1.0, %v3663_v27 }
 0x92b   :  { %3664 = vrcp.f32 %v573_v28  ;;  %v181_v28 = vadd.f32 %v3950_v12, %v4002_v60 }
 0x935   :  { %v3665_v29 = vpop.eup %3664 }
 0x936   :  { %v577_v32 = vmul.f32 %v3665_v29, %v485_v16 }
 0x999   :  { %v580_v30 = vpop.permute.xlu0 %579 }
 0x99a   :  { %v582_v31 = vmul.f32 %v3665_v29, %v580_v30 }
 0x99c   :  { %584 = vrot.lane.b32.xlu1 %v582_v31, %s3835_s12 }
 0xa0e   :  { %v585_v33 = vpop.permute.xlu1 %584 }
 0xa0f   :  { %v587_v34 = vadd.f32 %v585_v33, %v577_v32 }
 0xa11   :  { %3666 = vtanh.f32 %v587_v34 }
 0xa1b   :  { %v3667_v35 = vpop.eup %3666 }
 0xa1c   :  { %590 = vrot.lane.b32.xlu0 %v3667_v35, %s3835_s12 }
 0xa8e   :  { %v591_v36 = vpop.permute.xlu0 %590 }
 0xa8f   :  { %v593_v37 = vmul.f32 %v3665_v29, %v591_v36 }
 0xa91   :  { %595 = vrot.lane.b32.xlu1 %v593_v37, %s3836_s4 }
 0xb03   :  { %v596_v38 = vpop.permute.xlu1 %595 }
 0xb04   :  { %598 = vst.msk [vmem:[#allocation2 + $0x18] sm:$0xff] %vm189_vm2, %v596_v38  ;;  %3310 = vmatmul.mubr.msk.f32.vlgmr.msra.gmra.mrb[10].mxu0 %vm189_vm2, %v596_v38 }
 0xb05   :  { %3551 = vmatpush3.bf16.msra.mxu0 %v3913_v5  ;;  %3331 = vmatprep.mubr.msk.f32.mxu0 %vm3833_vm1, %v3834_v4 }
 0xb06   :  { %3552 = vmatprep.subr.bf16.mxu0 %v3832_v0 }
 0xb09   :  { %3554 = vmatpush3.bf16.msra.mxu0 %v3930_v10 }
 0xb0a   :  { %3562 = vmatprep.subr.bf16.mxu0 %v3561_v14 }
 0xb0b   :  { %v1010_v25 = vld [vmem:[#allocation2 + $0x18] sm:$0xff] }
 0xbd7   :  { %v667_v40 = vpop.f32.mrb[10].mxu0 }
 0xbd8   :  { %v671_v41 = vadd.f32 %v667_v40, %v171_v39  ;;  %v3311_v42 = vpop.f32.mrb[11].mxu0 }
 0xbda   :  { %3668 = vtanh.f32 %v671_v41  ;;  %v3051_v44 = vmul.f32 -1.442695, %v671_v41 }
 0xbdc   :  { %3670 = vpow2.f32 %v3051_v44 }
 0xbe4   :  { %v3669_v43 = vpop.eup %3668 }
 0xbe5   :  { %681 = vrot.lane.b32.xlu0 %v3669_v43, %s3835_s12 }
 0xbe6   :  { %v3671_v45 = vpop.eup %3670 }
 0xbe7   :  { %v675_v46 = vadd.f32 1.0, %v3671_v45 }
 0xbe9   :  { %3672 = vrcp.f32 %v675_v46 }
 0xbf3   :  { %v3673_v47 = vpop.eup %3672 }
 0xbf4   :  { %v679_v50 = vmul.f32 %v3673_v47, %v587_v34 }
 0xc57   :  { %v682_v48 = vpop.permute.xlu0 %681 }
 0xc58   :  { %v684_v49 = vmul.f32 %v3673_v47, %v682_v48  ;;  %v1019_v48 = vld [vmem:[%s4449_s6] sm:$0xff] }
 0xc5a   :  { %686 = vrot.lane.b32.xlu1 %v684_v49, %s3835_s12  ;;  %v1020_v49 = vld [vmem:[%s4449_s6 + $0x8] sm:$0xff] }
 0xccc   :  { %v687_v51 = vpop.permute.xlu1 %686 }
 0xccd   :  { %v689_v52 = vadd.f32 %v687_v51, %v679_v50  ;;  %v4102_v50 = vpack.c.bf16 %v1020_v49, %v1019_v48  ;;  %v1021_v51 = vld [vmem:[%s4449_s6 + $0x10] sm:$0xff] }
 0xccf   :  { %3674 = vtanh.f32 %v689_v52 }
 0xcd9   :  { %v3675_v53 = vpop.eup %3674 }
 0xcda   :  { %692 = vrot.lane.b32.xlu0 %v3675_v53, %s3835_s12 }
 0xd4c   :  { %v693_v54 = vpop.permute.xlu0 %692 }
 0xd4d   :  { %v695_v55 = vmul.f32 %v3673_v47, %v693_v54 }
 0xd4f   :  { %697 = vrot.lane.b32.xlu1 %v695_v55, %s3836_s4 }
 0xdc1   :  { %v698_v56 = vpop.permute.xlu1 %697 }
 0xdc2   :  { %700 = vst.msk [vmem:[#allocation2 + $0x20] sm:$0xff] %vm189_vm2, %v698_v56  ;;  %3321 = vmatmul.mubr.msk.f32.vlgmr.msra.gmra.mrb[6].mxu1 %vm189_vm2, %v698_v56 }
 0xdc3   :  { %3557 = vmatpush3.bf16.msra.mxu1 %v3913_v5  ;;  %3342 = vmatprep.mubr.msk.f32.mxu1 %vm3833_vm1, %v3834_v4 }
 0xdc4   :  { %3558 = vmatprep.subr.bf16.mxu1 %v3832_v0 }
 0xdc7   :  { %3560 = vmatpush3.bf16.msra.mxu1 %v3930_v10 }
 0xdc8   :  { %3569 = vmatprep.subr.bf16.mxu1 %v3832_v0 }
 0xdc9   :  { %v1011_v26 = vld [vmem:[#allocation2 + $0x20] sm:$0xff] }
 0xe95   :  { %v769_v61 = vpop.f32.mrb[6].mxu1 }
 0xe96   :  { %v773_v62 = vadd.f32 %v769_v61, %v176_v58  ;;  %v3322_v63 = vpop.f32.mrb[7].mxu1  ;;  %v186_v61 = vadd.f32 %v4000_v59, %v3950_v12 }
 0xe98   :  { %3676 = vtanh.f32 %v773_v62  ;;  %v3053_v5 = vmul.f32 -1.442695, %v773_v62 }
 0xe9a   :  { %3678 = vpow2.f32 %v3053_v5  ;;  %v4138_v5 = vld [vmem:[%s4450_s7] ss:$0 sm:$0xff] }
 0xea2   :  { %v3677_v1 = vpop.eup %3676 }
 0xea3   :  { %783 = vrot.lane.b32.xlu0 %v3677_v1, %s3835_s12 }
 0xea4   :  { %v3679_v2 = vpop.eup %3678 }
 0xea5   :  { %v777_v3 = vadd.f32 1.0, %v3679_v2 }
 0xea7   :  { %3680 = vrcp.f32 %v777_v3 }
 0xeb1   :  { %v3681_v6 = vpop.eup %3680 }
 0xeb2   :  { %v781_v8 = vmul.f32 %v3681_v6, %v689_v52  ;;  %v1022_v52 = vld [vmem:[%s4449_s6 + $0x18] sm:$0xff] }
 0xeb3   :  { %v4112_v53 = vpack.c.bf16 %v1022_v52, %v1021_v51 }
 0xf15   :  { %v784_v7 = vpop.permute.xlu0 %783 }
 0xf16   :  { %v786_v10 = vmul.f32 %v3681_v6, %v784_v7 }
 0xf18   :  { %788 = vrot.lane.b32.xlu1 %v786_v10, %s3835_s12 }
 0xf8a   :  { %v789_v9 = vpop.permute.xlu1 %788 }
 0xf8b   :  { %v791_v57 = vadd.f32 %v789_v9, %v781_v8 }
 0xf8d   :  { %3682 = vtanh.f32 %v791_v57 }
 0xf97   :  { %v3683_v15 = vpop.eup %3682 }
 0xf98   :  { %794 = vrot.lane.b32.xlu0 %v3683_v15, %s3835_s12 }
0x100a   :  { %v795_v16 = vpop.permute.xlu0 %794 }
0x100b   :  { %v797_v17 = vmul.f32 %v3681_v6, %v795_v16 }
0x100d   :  { %799 = vrot.lane.b32.xlu1 %v797_v17, %s3836_s4 }
0x107f   :  { %v800_v21 = vpop.permute.xlu1 %799 }
0x1080   :  { %802 = vst.msk [vmem:[#allocation2 + $0x28] sm:$0xff] %vm189_vm2, %v800_v21  ;;  %3332 = vmatmul.mubr.msk.f32.vlgmr.msra.gmra.mrb[12].mxu0 %vm189_vm2, %v800_v21 }
0x1081   :  { %3564 = vmatpush3.bf16.msra.mxu0 %v3561_v14  ;;  %3353 = vmatprep.mubr.msk.f32.mxu0 %vm189_vm2, %v1007_v22 }
0x1082   :  { %3566 = vmatprep.subr.bf16.mxu0 %v3565_v20 }
0x1085   :  { %3568 = vmatpush3.bf16.msra.mxu0 %v3565_v20 }
0x1086   :  { %3581 = vmatprep.subr.bf16.mxu0 %v3832_v0 }
0x1087   :  { %v1012_v27 = vld [vmem:[#allocation2 + $0x28] sm:$0xff] }
0x1088   :  { %3354 = vmatmul.mubr.msk.f32.vlgmr.msra.gmra.mrb[14].mxu0 %vm189_vm2, %v1008_v23 }
0x1089   :  { %3356 = vmatprep.mubr.msk.f32.mxu0 %vm189_vm2, %v1009_v24  ;;  %3583 = vmatpush3.bf16.msra.mxu0 %v4102_v50 }
0x108a   :  { %3584 = vmatprep.subr.bf16.mxu0 %v3832_v0 }
0x108c   :  { %3357 = vmatmul.mubr.msk.f32.gmra.mrb[16].mxu0 %vm189_vm2, %v1010_v25 }
0x108d   :  { %3359 = vmatprep.mubr.msk.f32.mxu0 %vm189_vm2, %v1011_v26  ;;  %3586 = vmatpush3.bf16.msra.mxu0 %v4112_v53 }
0x108e   :  { %3593 = vmatprep.subr.bf16.mxu0 %v3832_v0 }
0x1090   :  { %3360 = vmatmul.mubr.msk.f32.gmra.mrb[18].mxu0 %vm189_vm2, %v1012_v27 }
0x1153   :  { %v871_v29 = vpop.f32.mrb[12].mxu0 }
0x1154   :  { %v875_v30 = vadd.f32 %v871_v29, %v181_v28  ;;  %v3333_v31 = vpop.f32.mrb[13].mxu0 }
0x1156   :  { %3684 = vtanh.f32 %v875_v30  ;;  %v3055_v39 = vmul.f32 -1.442695, %v875_v30 }
0x1158   :  { %3686 = vpow2.f32 %v3055_v39 }
0x115b   :  { %v4080_v32 = vpop.f32.mrb[14].mxu0 }
0x115c   :  { %v1120_v33 = vpop.f32.mrb[15].mxu0 }
0x115d   :  { %v1121_v2 = vadd.f32 %v4138_v5, %v1120_v33 }
0x115f   :  { %v4082_v34 = vpop.f32.mrb[16].mxu0 }
0x1160   :  { %v3685_v35 = vpop.eup %3684  ;;  %v4084_v36 = vpop.f32.mrb[17].mxu0 }
0x1161   :  { %885 = vrot.lane.b32.xlu0 %v3685_v35, %s3835_s12  ;;  %v1126_v35 = vadd.f32 %v4080_v32, %v4138_v5 }
0x1162   :  { %v3687_v60 = vpop.eup %3686 }
0x1163   :  { %v4087_v37 = vpop.f32.mrb[18].mxu0  ;;  %v879_v40 = vadd.f32 1.0, %v3687_v60 }
0x1164   :  { %v4089_v38 = vpop.f32.mrb[19].mxu0 }
0x1165   :  { %3688 = vrcp.f32 %v879_v40 }
0x116f   :  { %v3689_v41 = vpop.eup %3688 }
0x1170   :  { %v883_v44 = vmul.f32 %v3689_v41, %v791_v57 }
0x11d3   :  { %v886_v42 = vpop.permute.xlu0 %885 }
0x11d4   :  { %v888_v43 = vmul.f32 %v3689_v41, %v886_v42 }
0x11d6   :  { %890 = vrot.lane.b32.xlu1 %v888_v43, %s3835_s12 }
0x1248   :  { %v891_v45 = vpop.permute.xlu1 %890 }
0x1249   :  { %v4092_v46 = vadd.f32 %v891_v45, %v883_v44 }
0x124b   :  { %3690 = vtanh.f32 %v4092_v46 }
0x1255   :  { %v3691_v47 = vpop.eup %3690 }
0x1256   :  { %896 = vrot.lane.b32.xlu0 %v3691_v47, %s3835_s12 }
0x12c8   :  { %v897_v54 = vpop.permute.xlu0 %896 }
0x12c9   :  { %v899_v55 = vmul.f32 %v3689_v41, %v897_v54 }
0x12cb   :  { %901 = vrot.lane.b32.xlu1 %v899_v55, %s3836_s4 }
0x133d   :  { %v902_v56 = vpop.permute.xlu1 %901 }
0x133e   :  { %904 = vst.msk [vmem:[#allocation2 + $0x30] sm:$0xff] %vm189_vm2, %v902_v56  ;;  %3343 = vmatmul.mubr.msk.f32.vlgmr.msra.gmra.mrb[8].mxu1 %vm189_vm2, %v902_v56 }
0x133f   :  { %3571 = vmatpush3.bf16.msra.mxu1 %v4102_v50  ;;  %3373 = vmatprep.mubr.msk.f32.mxu1 %vm3833_vm1, %v3834_v4 }
0x1340   :  { %3572 = vmatprep.subr.bf16.mxu1 %v3832_v0 }
0x1343   :  { %3574 = vmatpush3.bf16.msra.mxu1 %v4112_v53 }
0x1344   :  { %3575 = vmatprep.subr.bf16.mxu1 %v3832_v0 }
0x1345   :  { %v1013_v58 = vld [vmem:[#allocation2 + $0x30] sm:$0xff] }
0x1346   :  { %3374 = vmatmul.mubr.f32.vlgmr.msra.gmra.mrb[10].mxu1 %v3834_v4  ;;  %3362 = vmatprep.mubr.msk.f32.mxu0 %vm189_vm2, %v1013_v58 }
0x1347   :  { %3577 = vmatpush3.bf16.msra.mxu1 %v4102_v50  ;;  %3384 = vmatprep.mubr.msk.f32.mxu1 %vm3833_vm1, %v3834_v4 }
0x1348   :  { %3578 = vmatprep.subr.bf16.mxu1 %v3832_v0 }
0x134b   :  { %3580 = vmatpush3.bf16.msra.mxu1 %v4112_v53 }
0x134c   :  { %3587 = vmatprep.subr.bf16.mxu1 %v3832_v0 }
0x1411   :  { %v973_v62 = vpop.f32.mrb[8].mxu1 }
0x1412   :  { %v977_v63 = vadd.f32 %v973_v62, %v186_v61  ;;  %v3344_v1 = vpop.f32.mrb[9].mxu1 }
0x1414   :  { %v3057_v18 = vmul.f32 -1.442695, %v977_v63 }
0x1419   :  { %v1225_v3 = vpop.f32.mrb[10].mxu1 }
0x141a   :  { %v1229_v6 = vadd.f32 %v1225_v3, %v1121_v2  ;;  %v3375_v7 = vpop.f32.mrb[11].mxu1 }
0x141c   :  { %3692 = vtanh.f32 %v1229_v6  ;;  %v3067_v8 = vmul.f32 -1.442695, %v1229_v6 }
0x141e   :  { %3694 = vpow2.f32 %v3067_v8 }
0x1426   :  { %v3693_v10 = vpop.eup %3692 }
0x1427   :  { %1239 = vrot.lane.b32.xlu0 %v3693_v10, %s3835_s12 }
0x1428   :  { %v3695_v12 = vpop.eup %3694 }
0x1429   :  { %v1233_v59 = vadd.f32 1.0, %v3695_v12 }
0x142b   :  { %3696 = vrcp.f32 %v1233_v59 }
0x1435   :  { %v3697_v9 = vpop.eup %3696 }
0x1436   :  { %v1237_v13 = vmul.f32 0.0, %v3697_v9 }
0x1499   :  { %v1240_v57 = vpop.permute.xlu0 %1239 }
0x149a   :  { %v1242_v11 = vmul.f32 %v3697_v9, %v1240_v57 }
0x149c   :  { %1244 = vrot.lane.b32.xlu1 %v1242_v11, %s3835_s12 }
0x150e   :  { %v1245_v14 = vpop.permute.xlu1 %1244 }
0x150f   :  { %v1247_v15 = vadd.f32 %v1245_v14, %v1237_v13 }
0x1511   :  { %3698 = vtanh.f32 %v1247_v15 }
0x1512   :  { %3700 = vtanh.f32 %v977_v63  ;;  %v1131_v63 = vadd.f32 %v4138_v5, %v4084_v36 }
0x1513   :  { %3702 = vpow2.f32 %v3057_v18 }
0x151b   :  { %v3699_v16 = vpop.eup %3698 }
0x151c   :  { %1250 = vrot.lane.b32.xlu0 %v3699_v16, %s3835_s12  ;;  %v3701_v17 = vpop.eup %3700 }
0x151d   :  { %v3703_v19 = vpop.eup %3702 }
0x151e   :  { %v981_v20 = vadd.f32 1.0, %v3703_v19 }
0x1520   :  { %987 = vrot.lane.b32.xlu0 %v3701_v17, %s3835_s12  ;;  %3704 = vrcp.f32 %v981_v20  ;;  %v1136_v17 = vadd.f32 %v4082_v34, %v4138_v5 }
0x152a   :  { %v3705_v23 = vpop.eup %3704 }
0x152b   :  { %v985_v27 = vmul.f32 %v3705_v23, %v4092_v46 }
0x158e   :  { %v1251_v21 = vpop.permute.xlu0 %1250 }
0x158f   :  { %v4145_v22 = vmul.f32 %v3697_v9, %v1251_v21 }
0x1591   :  { %1261 = vrot.lane.b32.xlu1 %v4145_v22, %s3836_s4 }
0x1592   :  { %v988_v24 = vpop.permute.xlu0 %987 }
0x1593   :  { %v990_v25 = vmul.f32 %v3705_v23, %v988_v24 }
0x1595   :  { %992 = vrot.lane.b32.xlu0 %v990_v25, %s3835_s12 }
0x1603   :  { %v1262_v26 = vpop.permute.xlu1 %1261 }
0x1604   :  { %3385 = vmatmul.mubr.msk.f32.vlgmr.msra.gmra.mrb[12].mxu1 %vm189_vm2, %v1262_v26 }
0x1605   :  { %3589 = vmatpush3.bf16.msra.mxu1 %v4102_v50  ;;  %3406 = vmatprep.mubr.msk.f32.mxu1 %vm3833_vm1, %v3834_v4 }
0x1606   :  { %3590 = vmatprep.subr.bf16.mxu1 %v3832_v0 }
0x1607   :  { %v993_v28 = vpop.permute.xlu0 %992 }
0x1608   :  { %v995_v29 = vadd.f32 %v993_v28, %v985_v27 }
0x1609   :  { %3592 = vmatpush3.bf16.msra.mxu1 %v4112_v53 }
0x160a   :  { %3706 = vtanh.f32 %v995_v29  ;;  %3599 = vmatprep.subr.bf16.mxu1 %v3832_v0 }
0x1614   :  { %v3707_v30 = vpop.eup %3706 }
0x1615   :  { %998 = vrot.lane.b32.xlu0 %v3707_v30, %s3835_s12 }
0x1687   :  { %v999_v31 = vpop.permute.xlu0 %998 }
0x1688   :  { %v1001_v33 = vmul.f32 %v3705_v23, %v999_v31 }
0x168a   :  { %1003 = vrot.lane.b32.xlu0 %v1001_v33, %s3836_s4 }
0x16d7   :  { %v1331_v39 = vpop.f32.mrb[12].mxu1 }
0x16d8   :  { %v1335_v60 = vadd.f32 %v1331_v39, %v1126_v35  ;;  %v3386_v40 = vpop.f32.mrb[13].mxu1 }
0x16da   :  { %3708 = vtanh.f32 %v1335_v60  ;;  %v3069_v44 = vmul.f32 -1.442695, %v1335_v60  ;;  %v1141_v60 = vadd.f32 %v4138_v5, %v4089_v38 }
0x16dc   :  { %3710 = vpow2.f32 %v3069_v44 }
0x16e4   :  { %v3709_v41 = vpop.eup %3708 }
0x16e5   :  { %1345 = vrot.lane.b32.xlu1 %v3709_v41, %s3835_s12 }
0x16e6   :  { %v3711_v45 = vpop.eup %3710 }
0x16e7   :  { %v1339_v32 = vadd.f32 1.0, %v3711_v45 }
0x16e9   :  { %3712 = vrcp.f32 %v1339_v32 }
0x16f3   :  { %v3713_v46 = vpop.eup %3712 }
0x16f4   :  { %v1343_v49 = vmul.f32 %v3713_v46, %v1247_v15 }
0x16fc   :  { %v1004_v42 = vpop.permute.xlu0 %1003 }
0x16fd   :  { %1006 = vst.msk [vmem:[#allocation2 + $0x38] sm:$0xff] %vm189_vm2, %v1004_v42 }
0x1704   :  { %v1014_v43 = vld [vmem:[#allocation2 + $0x38] sm:$0xff] }
0x1705   :  { %3363 = vmatmul.mubr.msk.f32.gmra.mrb[20].mxu0 %vm189_vm2, %v1014_v43 }
0x1706   :  { %3395 = vmatprep.mubr.msk.f32.mxu0 %vm3833_vm1, %v3834_v4 }
0x1757   :  { %v1346_v47 = vpop.permute.xlu1 %1345 }
0x1758   :  { %v1348_v48 = vmul.f32 %v3713_v46, %v1346_v47 }
0x175a   :  { %1350 = vrot.lane.b32.xlu1 %v1348_v48, %s3835_s12 }
0x17cc   :  { %v1351_v51 = vpop.permute.xlu1 %1350 }
0x17cd   :  { %v1353_v52 = vadd.f32 %v1351_v51, %v1343_v49 }
0x17cf   :  { %3714 = vtanh.f32 %v1353_v52 }
0x17d8   :  { %v4168_v54 = vpop.f32.mrb[20].mxu0 }
0x17d9   :  { %v3715_v55 = vpop.eup %3714  ;;  %v4170_v56 = vpop.f32.mrb[21].mxu0 }
0x17da   :  { %1356 = vrot.lane.b32.xlu1 %v3715_v55, %s3835_s12 }
0x184c   :  { %v1357_v58 = vpop.permute.xlu1 %1356 }
0x184d   :  { %v4173_v61 = vmul.f32 %v3713_v46, %v1357_v58 }
0x184f   :  { %1367 = vrot.lane.b32.xlu1 %v4173_v61, %s3836_s4 }
0x18c1   :  { %v1368_v62 = vpop.permute.xlu1 %1367 }
0x18c2   :  { %3396 = vmatmul.mubr.msk.f32.vlgmr.msra.gmra.mrb[22].mxu0 %vm189_vm2, %v1368_v62 }
0x18c3   :  { %3595 = vmatpush3.bf16.msra.mxu0 %v4102_v50  ;;  %3417 = vmatprep.mubr.msk.f32.mxu0 %vm3833_vm1, %v3834_v4 }
0x18c4   :  { %3596 = vmatprep.subr.bf16.mxu0 %v3832_v0 }
0x18c7   :  { %3598 = vmatpush3.bf16.msra.mxu0 %v4112_v53 }
0x18c8   :  { %3605 = vmatprep.subr.bf16.mxu0 %v3832_v0 }
0x1995   :  { %v1437_v1 = vpop.f32.mrb[22].mxu0 }
0x1996   :  { %v1441_v2 = vadd.f32 %v1437_v1, %v1131_v63  ;;  %v3397_v3 = vpop.f32.mrb[23].mxu0  ;;  %v1146_v63 = vadd.f32 %v4087_v37, %v4138_v5 }
0x1998   :  { %3716 = vtanh.f32 %v1441_v2  ;;  %v3071_v7 = vmul.f32 -1.442695, %v1441_v2 }
0x199a   :  { %3718 = vpow2.f32 %v3071_v7 }
0x19a2   :  { %v3717_v6 = vpop.eup %3716 }
0x19a3   :  { %1451 = vrot.lane.b32.xlu0 %v3717_v6, %s3835_s12 }
0x19a4   :  { %v3719_v10 = vpop.eup %3718 }
0x19a5   :  { %v1445_v8 = vadd.f32 1.0, %v3719_v10 }
0x19a7   :  { %3720 = vrcp.f32 %v1445_v8 }
0x19b1   :  { %v3721_v12 = vpop.eup %3720 }
0x19b2   :  { %v1449_v57 = vmul.f32 %v3721_v12, %v1353_v52 }
0x1a15   :  { %v1452_v59 = vpop.permute.xlu0 %1451 }
0x1a16   :  { %v1454_v9 = vmul.f32 %v3721_v12, %v1452_v59 }
0x1a18   :  { %1456 = vrot.lane.b32.xlu1 %v1454_v9, %s3835_s12 }
0x1a8a   :  { %v1457_v11 = vpop.permute.xlu1 %1456 }
0x1a8b   :  { %v1459_v36 = vadd.f32 %v1457_v11, %v1449_v57 }
0x1a8d   :  { %3722 = vtanh.f32 %v1459_v36 }
0x1a97   :  { %v3723_v13 = vpop.eup %3722 }
0x1a98   :  { %1462 = vrot.lane.b32.xlu0 %v3723_v13, %s3835_s12  ;;  %v1151_v13 = vadd.f32 %v4138_v5, %v4170_v56 }
0x1b0a   :  { %v1463_v14 = vpop.permute.xlu0 %1462 }
0x1b0b   :  { %v4189_v15 = vmul.f32 %v3721_v12, %v1463_v14 }
0x1b0d   :  { %1473 = vrot.lane.b32.xlu1 %v4189_v15, %s3836_s4 }
0x1b7f   :  { %v1474_v16 = vpop.permute.xlu1 %1473 }
0x1b80   :  { %3407 = vmatmul.mubr.msk.f32.vlgmr.msra.gmra.mrb[14].mxu1 %vm189_vm2, %v1474_v16 }
0x1b81   :  { %3601 = vmatpush3.bf16.msra.mxu1 %v4102_v50  ;;  %3428 = vmatprep.mubr.msk.f32.mxu1 %vm3833_vm1, %v3834_v4 }
0x1b82   :  { %3602 = vmatprep.subr.bf16.mxu1 %v3832_v0 }
0x1b85   :  { %3604 = vmatpush3.bf16.msra.mxu1 %v4112_v53 }
0x1b86   :  { %3611 = vmatprep.subr.bf16.mxu1 %v3832_v0 }
0x1c53   :  { %v1543_v18 = vpop.f32.mrb[14].mxu1 }
0x1c54   :  { %v1547_v19 = vadd.f32 %v1543_v18, %v1136_v17  ;;  %v3408_v20 = vpop.f32.mrb[15].mxu1 }
0x1c56   :  { %3724 = vtanh.f32 %v1547_v19  ;;  %v3073_v23 = vmul.f32 -1.442695, %v1547_v19 }
0x1c58   :  { %3726 = vpow2.f32 %v3073_v23 }
0x1c60   :  { %v3725_v21 = vpop.eup %3724 }
0x1c61   :  { %1557 = vrot.lane.b32.xlu0 %v3725_v21, %s3835_s12 }
0x1c62   :  { %v3727_v24 = vpop.eup %3726 }
0x1c63   :  { %v1551_v25 = vadd.f32 1.0, %v3727_v24 }
0x1c65   :  { %3728 = vrcp.f32 %v1551_v25 }
0x1c6f   :  { %v3729_v26 = vpop.eup %3728 }
0x1c70   :  { %v1555_v29 = vmul.f32 %v3729_v26, %v1459_v36 }
0x1cd3   :  { %v1558_v27 = vpop.permute.xlu0 %1557 }
0x1cd4   :  { %v1560_v28 = vmul.f32 %v3729_v26, %v1558_v27 }
0x1cd6   :  { %1562 = vrot.lane.b32.xlu1 %v1560_v28, %s3835_s12 }
0x1d48   :  { %v1563_v30 = vpop.permute.xlu1 %1562 }
0x1d49   :  { %v1565_v34 = vadd.f32 %v1563_v30, %v1555_v29  ;;  %v2010_v29 = vld [vmem:[%s4451_s8] sm:$0xff]  ;;  %v2011_v30 = vld [vmem:[%s4451_s8 + $0x8] sm:$0xff] }
0x1d4b   :  { %3730 = vtanh.f32 %v1565_v34 }
0x1d55   :  { %v3731_v31 = vpop.eup %3730 }
0x1d56   :  { %1568 = vrot.lane.b32.xlu0 %v3731_v31, %s3835_s12 }
0x1dc8   :  { %v1569_v33 = vpop.permute.xlu0 %1568 }
0x1dc9   :  { %v4205_v35 = vmul.f32 %v3729_v26, %v1569_v33  ;;  %v1254_v26 = vmax.f32 %v4145_v22, 0.0  ;;  %v2012_v22 = vld [vmem:[%s4451_s8 + $0x10] sm:$0xff]  ;;  %v2013_v33 = vld [vmem:[%s4451_s8 + $0x18] sm:$0xff] }
0x1dcb   :  { %1579 = vrot.lane.b32.xlu1 %v4205_v35, %s3836_s4 }
0x1e3d   :  { %v1580_v39 = vpop.permute.xlu1 %1579 }
0x1e3e   :  { %3418 = vmatmul.mubr.msk.f32.vlgmr.msra.gmra.mrb[24].mxu0 %vm189_vm2, %v1580_v39  ;;  %v3621_v39 = vpack.c.bf16 %v2013_v33, %v2012_v22 }
0x1e3f   :  { %3607 = vmatpush3.bf16.msra.mxu0 %v4102_v50  ;;  %3439 = vmatprep.mubr.msk.f32.mxu0 %vm3833_vm1, %v3834_v4 }
0x1e40   :  { %3608 = vmatprep.subr.bf16.mxu0 %v3832_v0 }
0x1e43   :  { %3610 = vmatpush3.bf16.msra.mxu0 %v4112_v53 }
0x1f11   :  { %v1649_v40 = vpop.f32.mrb[24].mxu0 }
0x1f12   :  { %v1653_v41 = vadd.f32 %v1649_v40, %v1141_v60  ;;  %v3419_v42 = vpop.f32.mrb[25].mxu0 }
0x1f14   :  { %3732 = vtanh.f32 %v1653_v41  ;;  %v3075_v44 = vmul.f32 -1.442695, %v1653_v41  ;;  %v1360_v41 = vmax.f32 %v4173_v61, 0.0 }
0x1f16   :  { %3734 = vpow2.f32 %v3075_v44 }
0x1f1e   :  { %v3733_v43 = vpop.eup %3732 }
0x1f1f   :  { %1663 = vrot.lane.b32.xlu0 %v3733_v43, %s3835_s12 }
0x1f20   :  { %v3735_v45 = vpop.eup %3734 }
0x1f21   :  { %v1657_v32 = vadd.f32 1.0, %v3735_v45 }
0x1f23   :  { %3736 = vrcp.f32 %v1657_v32  ;;  %v4277_v32 = vld [vmem:[%s4452_s9] sm:$0xf] }
0x1f2d   :  { %v3737_v46 = vpop.eup %3736 }
0x1f2e   :  { %v1661_v49 = vmul.f32 %v3737_v46, %v1565_v34  ;;  %v3617_v34 = vpack.c.bf16 %v2011_v30, %v2010_v29  ;;  %v1572_v30 = vmax.f32 %v4205_v35, 0.0 }
0x1f30   :  { %3618 = vmatprep.subr.bf16.mxu0 %v3617_v34 }
0x1f91   :  { %v1664_v47 = vpop.permute.xlu0 %1663 }
0x1f92   :  { %v1666_v48 = vmul.f32 %v3737_v46, %v1664_v47 }
0x1f94   :  { %1668 = vrot.lane.b32.xlu1 %v1666_v48, %s3835_s12  ;;  %v1156_v48 = vadd.f32 %v4168_v54, %v4138_v5 }
0x2006   :  { %v1669_v51 = vpop.permute.xlu1 %1668 }
0x2007   :  { %v1671_v38 = vadd.f32 %v1669_v51, %v1661_v49  ;;  %v4299_v49 = vld [vmem:[%s4453_s10] ss:$0 sm:$0xff]  ;;  %s3838_s10 = smov 4  }
0x2009   :  { %3738 = vtanh.f32 %v1671_v38 }
0x2013   :  { %v3739_v52 = vpop.eup %3738 }
0x2014   :  { %1674 = vrot.lane.b32.xlu0 %v3739_v52, %s3835_s12 }
0x2086   :  { %v1675_v55 = vpop.permute.xlu0 %1674 }
0x2087   :  { %v4220_v58 = vmul.f32 %v3737_v46, %v1675_v55 }
0x2089   :  { %1685 = vrot.lane.b32.xlu1 %v4220_v58, %s3836_s4 }
0x20fb   :  { %v1686_v62 = vpop.permute.xlu1 %1685 }
0x20fc   :  { %3429 = vmatmul.mubr.msk.f32.vlgmr.msra.gmra.mrb[16].mxu1 %vm189_vm2, %v1686_v62 }
0x20fd   :  { %3613 = vmatpush3.bf16.msra.mxu1 %v4102_v50  ;;  %3450 = vmatprep.mubr.msk.f32.mxu1 %vm3833_vm1, %v3834_v4 }
0x20fe   :  { %3614 = vmatprep.subr.bf16.mxu1 %v3832_v0 }
0x2101   :  { %3616 = vmatpush3.bf16.msra.mxu1 %v4112_v53 }
0x2102   :  { %3473 = vmatprep.subr.mxu1 %v3834_v4 }
0x21cf   :  { %v1755_v1 = vpop.f32.mrb[16].mxu1 }
0x21d0   :  { %v1759_v2 = vadd.f32 %v1755_v1, %v1146_v63  ;;  %v3430_v3 = vpop.f32.mrb[17].mxu1 }
0x21d2   :  { %3740 = vtanh.f32 %v1759_v2  ;;  %v3077_v50 = vmul.f32 -1.442695, %v1759_v2 }
0x21d4   :  { %3742 = vpow2.f32 %v3077_v50 }
0x21dc   :  { %v3741_v6 = vpop.eup %3740 }
0x21dd   :  { %1769 = vrot.lane.b32.xlu0 %v3741_v6, %s3835_s12 }
0x21de   :  { %v3743_v7 = vpop.eup %3742 }
0x21df   :  { %v1763_v10 = vadd.f32 1.0, %v3743_v7 }
0x21e1   :  { %3744 = vrcp.f32 %v1763_v10 }
0x21eb   :  { %v3745_v0 = vpop.eup %3744 }
0x21ec   :  { %v1767_v12 = vmul.f32 %v3745_v0, %v1671_v38 }
0x224f   :  { %v1770_v8 = vpop.permute.xlu0 %1769 }
0x2250   :  { %v1772_v53 = vmul.f32 %v3745_v0, %v1770_v8 }
0x2252   :  { %1774 = vrot.lane.b32.xlu1 %v1772_v53, %s3835_s12 }
0x22c4   :  { %v1775_v59 = vpop.permute.xlu1 %1774 }
0x22c5   :  { %v1777_v37 = vadd.f32 %v1775_v59, %v1767_v12 }
0x22c7   :  { %3746 = vtanh.f32 %v1777_v37 }
0x22d1   :  { %v3747_v9 = vpop.eup %3746 }
0x22d2   :  { %1780 = vrot.lane.b32.xlu0 %v3747_v9, %s3835_s12 }
0x2344   :  { %v1781_v57 = vpop.permute.xlu0 %1780 }
0x2345   :  { %v4236_v11 = vmul.f32 %v3745_v0, %v1781_v57 }
0x2347   :  { %1791 = vrot.lane.b32.xlu1 %v4236_v11, %s3836_s4 }
0x23b9   :  { %v1792_v36 = vpop.permute.xlu1 %1791 }
0x23ba   :  { %3440 = vmatmul.mubr.msk.f32.vlgmr.msra.gmra.mrb[26].mxu0 %vm189_vm2, %v1792_v36 }
0x23bb   :  { %3620 = vmatpush3.bf16.msra.mxu0 %v3617_v34 }
0x23bc   :  { %3622 = vmatprep.subr.bf16.mxu0 %v3621_v39 }
0x23bf   :  { %3624 = vmatpush3.bf16.msra.mxu0 %v3621_v39 }
0x23c0   :  { %3493 = vmatprep.subr.mxu0 %v3834_v4 }
0x248d   :  { %v1861_v14 = vpop.f32.mrb[26].mxu0 }
0x248e   :  { %v1865_v16 = vadd.f32 %v1861_v14, %v1151_v13  ;;  %v3441_v17 = vpop.f32.mrb[27].mxu0 }
0x2490   :  { %3748 = vtanh.f32 %v1865_v16  ;;  %v3079_v19 = vmul.f32 -1.442695, %v1865_v16 }
0x2492   :  { %3750 = vpow2.f32 %v3079_v19 }
0x249a   :  { %v3749_v18 = vpop.eup %3748 }
0x249b   :  { %1875 = vrot.lane.b32.xlu0 %v3749_v18, %s3835_s12 }
0x249c   :  { %v3751_v20 = vpop.eup %3750 }
0x249d   :  { %v1869_v21 = vadd.f32 1.0, %v3751_v20 }
0x249f   :  { %3752 = vrcp.f32 %v1869_v21 }
0x24a9   :  { %v3753_v23 = vpop.eup %3752 }
0x24aa   :  { %v1873_v56 = vmul.f32 %v3753_v23, %v1777_v37 }
0x250d   :  { %v1876_v24 = vpop.permute.xlu0 %1875 }
0x250e   :  { %v1878_v25 = vmul.f32 %v3753_v23, %v1876_v24 }
0x2510   :  { %1880 = vrot.lane.b32.xlu1 %v1878_v25, %s3835_s12 }
0x2514   :  { %1256 = vrot.lane.b32.xlu1 %v1254_v26, %s3836_s4 }
0x2582   :  { %v1881_v27 = vpop.permute.xlu1 %1880 }
0x2583   :  { %v4247_v28 = vadd.f32 %v1881_v27, %v1873_v56 }
0x2585   :  { %3754 = vtanh.f32 %v4247_v28 }
0x2586   :  { %v1257_v31 = vpop.permute.xlu1 %1256 }
0x2587   :  { %1259 = vst.msk [vmem:[#allocation2] sm:$0xff] %vm189_vm2, %v1257_v31 }
0x258e   :  { %v2002_v60 = vld [vmem:[#allocation2] sm:$0xff] }
0x258f   :  { %v3755_v40 = vpop.eup %3754  ;;  %3461 = vmatprep.mubr.msk.f32.mxu0 %vm189_vm2, %v2002_v60 }
0x2590   :  { %1886 = vrot.lane.b32.xlu0 %v3755_v40, %s3835_s12 }
0x2594   :  { %1362 = vrot.lane.b32.xlu0 %v1360_v41, %s3836_s4 }
0x2602   :  { %v1887_v42 = vpop.permute.xlu0 %1886 }
0x2603   :  { %v4268_v43 = vmul.f32 %v3753_v23, %v1887_v42  ;;  %v1466_v23 = vmax.f32 %v4189_v15, 0.0 }
0x2605   :  { %1897 = vrot.lane.b32.xlu1 %v4268_v43, %s3836_s4 }
0x2606   :  { %v1363_v44 = vpop.permute.xlu0 %1362 }
0x2607   :  { %1365 = vst.msk [vmem:[#allocation2 + $0x8] sm:$0xff] %vm189_vm2, %v1363_v44 }
0x260e   :  { %v2003_v45 = vld [vmem:[#allocation2 + $0x8] sm:$0xff] }
0x260f   :  { %3462 = vmatmul.mubr.msk.f32.vlgmr.msra.gmra.mrb[28].mxu0 %vm189_vm2, %v2003_v45 }
0x2610   :  { %3494 = vmatpush3.msk.msra.mxu0 %vm2154_vm3, %v4277_v32 }
0x2611   :  { %3503 = vmatprep.subr.mxu0 %v3834_v4 }
0x2677   :  { %v1898_v61 = vpop.permute.xlu1 %1897 }
0x2678   :  { %3451 = vmatmul.mubr.msk.f32.vlgmr.msra.gmra.mrb[18].mxu1 %vm189_vm2, %v1898_v61 }
0x2679   :  { %3474 = vmatpush3.msk.msra.mxu1 %vm2154_vm3, %v4277_v32  ;;  %3475 = vmatprep.mubr.msk.f32.mxu1 %vm3833_vm1, %v3834_v4 }
0x267a   :  { %3478 = vmatprep.subr.mxu1 %v3834_v4 }
0x267c   :  { %3476 = vmatmul.mubr.f32.vlgmr.msra.gmra.mrb[20].mxu1 %v3834_v4 }
0x267d   :  { %3479 = vmatpush3.msk.msra.mxu1 %vm2154_vm3, %v4277_v32  ;;  %3480 = vmatprep.mubr.msk.f32.mxu1 %vm3833_vm1, %v3834_v4 }
0x267e   :  { %3483 = vmatprep.subr.mxu1 %v3834_v4 }
0x26e2   :  { %v3463_v46 = vpop.f32.mrb[28].mxu0 }
0x26e3   :  { %v2112_v47 = vpop.f32.mrb[29].mxu0  ;;  %v2118_v9 = vadd.f32 %v3463_v46, %v4299_v49 }
0x26e4   :  { %v2113_v55 = vadd.f32 %v4299_v49, %v2112_v47 }
0x274b   :  { %v1967_v51 = vpop.f32.mrb[18].mxu1 }
0x274c   :  { %v4301_v38 = vadd.f32 %v1967_v51, %v1156_v48  ;;  %v3452_v52 = vpop.f32.mrb[19].mxu1 }
0x274f   :  { %v2224_v62 = vpop.f32.mrb[20].mxu1 }
0x2750   :  { %v2228_v63 = vadd.f32 %v2224_v62, %v2113_v55  ;;  %v3477_v1 = vpop.f32.mrb[21].mxu1 }
0x2752   :  { %3756 = vtanh.f32 %v2228_v63  ;;  %v3092_v5 = vmul.f32 -1.442695, %v2228_v63 }
0x2754   :  { %3758 = vpow2.f32 %v3092_v5 }
0x275c   :  { %v3757_v2 = vpop.eup %3756 }
0x275d   :  { %2238 = vrot.lane.b32.xlu0 %v3757_v2, %s3837_s28  ;;  %v3081_v2 = vmul.f32 -1.442695, %v4301_v38 }
0x275e   :  { %v3759_v54 = vpop.eup %3758 }
0x275f   :  { %v2232_v3 = vadd.f32 1.0, %v3759_v54 }
0x2761   :  { %3760 = vrcp.f32 %v2232_v3 }
0x276b   :  { %v3761_v6 = vpop.eup %3760 }
0x276c   :  { %v2236_v10 = vmul.f32 0.0, %v3761_v6 }
0x27cf   :  { %v2239_v50 = vpop.permute.xlu0 %2238 }
0x27d0   :  { %v2241_v7 = vmul.f32 %v3761_v6, %v2239_v50 }
0x27d2   :  { %2243 = vrot.lane.b32.xlu1 %v2241_v7, %s3838_s10 }
0x2844   :  { %v2244_v0 = vpop.permute.xlu1 %2243 }
0x2845   :  { %v2246_v8 = vadd.f32 %v2244_v0, %v2236_v10 }
0x2847   :  { %3762 = vtanh.f32 %v2246_v8 }
0x2851   :  { %v3763_v53 = vpop.eup %3762 }
0x2852   :  { %2249 = vrot.lane.b32.xlu0 %v3763_v53, %s3838_s10 }
0x28c4   :  { %v2250_v12 = vpop.permute.xlu0 %2249 }
0x28c5   :  { %v4307_v59 = vmul.f32 %v3761_v6, %v2250_v12 }
0x28c7   :  { %2261 = vrot.lane.b32.xlu1 %v4307_v59, %s3839_s2 }
0x2939   :  { %v2262_v37 = vpop.permute.xlu1 %2261 }
0x293a   :  { %3481 = vmatmul.mubr.msk.f32.vlgmr.msra.gmra.mrb[22].mxu1 %vm2151_vm4, %v2262_v37  ;;  %v1678_v37 = vmax.f32 %v4220_v58, 0.0 }
0x293b   :  { %3484 = vmatpush3.msk.msra.mxu1 %vm2154_vm3, %v4277_v32  ;;  %3485 = vmatprep.mubr.msk.f32.mxu1 %vm3833_vm1, %v3834_v4 }
0x293c   :  { %3488 = vmatprep.subr.mxu1 %v3834_v4 }
0x2a0d   :  { %v2331_v57 = vpop.f32.mrb[22].mxu1 }
0x2a0e   :  { %v2335_v36 = vadd.f32 %v2331_v57, %v2118_v9  ;;  %v3482_v13 = vpop.f32.mrb[23].mxu1  ;;  %v1890_v9 = vmax.f32 %v4268_v43, 0.0 }
0x2a10   :  { %3764 = vtanh.f32 %v2335_v36  ;;  %v3095_v16 = vmul.f32 -1.442695, %v2335_v36 }
0x2a12   :  { %3766 = vpow2.f32 %v3095_v16 }
0x2a1a   :  { %v3765_v14 = vpop.eup %3764 }
0x2a1b   :  { %2345 = vrot.lane.b32.xlu0 %v3765_v14, %s3837_s28 }
0x2a1c   :  { %v3767_v17 = vpop.eup %3766 }
0x2a1d   :  { %v2339_v18 = vadd.f32 1.0, %v3767_v17 }
0x2a1f   :  { %3768 = vrcp.f32 %v2339_v18 }
0x2a29   :  { %v3769_v19 = vpop.eup %3768 }
0x2a2a   :  { %v2343_v24 = vmul.f32 %v3769_v19, %v2246_v8 }
0x2a8d   :  { %v2346_v20 = vpop.permute.xlu0 %2345 }
0x2a8e   :  { %v2348_v21 = vmul.f32 %v3769_v19, %v2346_v20 }
0x2a90   :  { %2350 = vrot.lane.b32.xlu1 %v2348_v21, %s3838_s10 }
0x2a94   :  { %1468 = vrot.lane.b32.xlu1 %v1466_v23, %s3836_s4 }
0x2b02   :  { %v2351_v25 = vpop.permute.xlu1 %2350 }
0x2b03   :  { %v2353_v26 = vadd.f32 %v2351_v25, %v2343_v24 }
0x2b05   :  { %3770 = vtanh.f32 %v2353_v26 }
0x2b06   :  { %v1469_v56 = vpop.permute.xlu1 %1468 }
0x2b07   :  { %1471 = vst.msk [vmem:[#allocation2 + $0x10] sm:$0xff] %vm189_vm2, %v1469_v56 }
0x2b0e   :  { %v2004_v27 = vld [vmem:[#allocation2 + $0x10] sm:$0xff] }
0x2b0f   :  { %v3771_v29 = vpop.eup %3770  ;;  %3464 = vmatprep.mubr.msk.f32.mxu0 %vm189_vm2, %v2004_v27 }
0x2b10   :  { %2356 = vrot.lane.b32.xlu0 %v3771_v29, %s3838_s10  ;;  %v1784_v29 = vmax.f32 %v4236_v11, 0.0 }
0x2b14   :  { %1574 = vrot.lane.b32.xlu0 %v1572_v30, %s3836_s4 }
0x2b82   :  { %v2357_v15 = vpop.permute.xlu0 %2356 }
0x2b83   :  { %v4327_v34 = vmul.f32 %v3769_v19, %v2357_v15 }
0x2b85   :  { %2368 = vrot.lane.b32.xlu1 %v4327_v34, %s3839_s2 }
0x2b86   :  { %v1575_v31 = vpop.permute.xlu0 %1574 }
0x2b87   :  { %1577 = vst.msk [vmem:[#allocation2 + $0x18] sm:$0xff] %vm189_vm2, %v1575_v31 }
0x2b8e   :  { %v2005_v22 = vld [vmem:[#allocation2 + $0x18] sm:$0xff] }
0x2b8f   :  { %3465 = vmatmul.mubr.msk.f32.gmra.mrb[30].mxu0 %vm189_vm2, %v2005_v22 }
0x2bf7   :  { %v2369_v33 = vpop.permute.xlu1 %2368 }
0x2bf8   :  { %3486 = vmatmul.mubr.msk.f32.vlgmr.msra.gmra.mrb[24].mxu1 %vm2151_vm4, %v2369_v33 }
0x2bf9   :  { %3489 = vmatpush3.msk.msra.mxu1 %vm2154_vm3, %v4277_v32  ;;  %3490 = vmatprep.mubr.msk.f32.mxu1 %vm3833_vm1, %v3834_v4 }
0x2bfa   :  { %3498 = vmatprep.subr.mxu1 %v3834_v4 }
0x2c62   :  { %v3466_v35 = vpop.f32.mrb[30].mxu0 }
0x2c63   :  { %v2122_v39 = vpop.f32.mrb[31].mxu0  ;;  %v2128_v14 = vadd.f32 %v3466_v35, %v4299_v49 }
0x2c64   :  { %v2123_v60 = vadd.f32 %v4299_v49, %v2122_v39 }
0x2ccb   :  { %v2438_v40 = vpop.f32.mrb[24].mxu1 }
0x2ccc   :  { %v2442_v41 = vadd.f32 %v2438_v40, %v2123_v60  ;;  %v3487_v42 = vpop.f32.mrb[25].mxu1 }
0x2cce   :  { %3772 = vtanh.f32 %v2442_v41  ;;  %v3098_v45 = vmul.f32 -1.442695, %v2442_v41 }
0x2cd0   :  { %3774 = vpow2.f32 %v3098_v45 }
0x2cd8   :  { %v3773_v44 = vpop.eup %3772 }
0x2cd9   :  { %2452 = vrot.lane.b32.xlu0 %v3773_v44, %s3837_s28 }
0x2cda   :  { %v3775_v61 = vpop.eup %3774 }
0x2cdb   :  { %v2446_v46 = vadd.f32 1.0, %v3775_v61 }
0x2cdd   :  { %3776 = vrcp.f32 %v2446_v46 }
0x2ce7   :  { %v3777_v47 = vpop.eup %3776 }
0x2ce8   :  { %v2450_v52 = vmul.f32 %v3777_v47, %v2353_v26 }
0x2d4b   :  { %v2453_v48 = vpop.permute.xlu0 %2452 }
0x2d4c   :  { %v2455_v51 = vmul.f32 %v3777_v47, %v2453_v48 }
0x2d4e   :  { %2457 = vrot.lane.b32.xlu1 %v2455_v51, %s3838_s10 }
0x2dc0   :  { %v2458_v55 = vpop.permute.xlu1 %2457 }
0x2dc1   :  { %v2460_v62 = vadd.f32 %v2458_v55, %v2450_v52 }
0x2dc3   :  { %3778 = vtanh.f32 %v2460_v62 }
0x2dc4   :  { %3780 = vtanh.f32 %v4301_v38 }
0x2dc5   :  { %3782 = vpow2.f32 %v3081_v2 }
0x2dcd   :  { %v3779_v63 = vpop.eup %3778 }
0x2dce   :  { %2463 = vrot.lane.b32.xlu0 %v3779_v63, %s3838_s10  ;;  %v3781_v1 = vpop.eup %3780 }
0x2dcf   :  { %v3783_v5 = vpop.eup %3782 }
0x2dd0   :  { %v1975_v54 = vadd.f32 1.0, %v3783_v5 }
0x2dd2   :  { %1981 = vrot.lane.b32.xlu0 %v3781_v1, %s3835_s12  ;;  %3784 = vrcp.f32 %v1975_v54 }
0x2ddc   :  { %v3785_v50 = vpop.eup %3784 }
0x2ddd   :  { %v1979_v38 = vmul.f32 %v3785_v50, %v4247_v28 }
0x2e40   :  { %v2464_v3 = vpop.permute.xlu0 %2463 }
0x2e41   :  { %v4346_v6 = vmul.f32 %v3777_v47, %v2464_v3 }
0x2e43   :  { %2475 = vrot.lane.b32.xlu1 %v4346_v6, %s3839_s2 }
0x2e44   :  { %v1982_v7 = vpop.permute.xlu0 %1981 }
0x2e45   :  { %v1984_v10 = vmul.f32 %v3785_v50, %v1982_v7 }
0x2e47   :  { %1986 = vrot.lane.b32.xlu0 %v1984_v10, %s3835_s12 }
0x2eb5   :  { %v2476_v0 = vpop.permute.xlu1 %2475 }
0x2eb6   :  { %3491 = vmatmul.mubr.msk.f32.vlgmr.msra.gmra.mrb[26].mxu1 %vm2151_vm4, %v2476_v0 }
0x2eb7   :  { %3499 = vmatpush3.msk.msra.mxu1 %vm2154_vm3, %v4277_v32  ;;  %3500 = vmatprep.mubr.msk.f32.mxu1 %vm3833_vm1, %v3834_v4 }
0x2eb8   :  { %3508 = vmatprep.subr.mxu1 %v3834_v4 }
0x2eb9   :  { %v1987_v8 = vpop.permute.xlu0 %1986 }
0x2eba   :  { %v1989_v53 = vadd.f32 %v1987_v8, %v1979_v38 }
0x2ebc   :  { %3786 = vtanh.f32 %v1989_v53 }
0x2ec6   :  { %v3787_v12 = vpop.eup %3786 }
0x2ec7   :  { %1992 = vrot.lane.b32.xlu0 %v3787_v12, %s3835_s12 }
0x2ecb   :  { %1680 = vrot.lane.b32.xlu0 %v1678_v37, %s3836_s4 }
0x2ecf   :  { %1892 = vrot.lane.b32.xlu0 %v1890_v9, %s3836_s4 }
0x2f39   :  { %v1993_v57 = vpop.permute.xlu0 %1992 }
0x2f3a   :  { %v1995_v30 = vmul.f32 %v3785_v50, %v1993_v57 }
0x2f3c   :  { %v1996_v15 = vmax.f32 %v1995_v30, 0.0 }
0x2f3d   :  { %v1681_v36 = vpop.permute.xlu0 %1680 }
0x2f3e   :  { %1683 = vst.msk [vmem:[#allocation2 + $0x20] sm:$0xff] %vm189_vm2, %v1681_v36 }
0x2f41   :  { %v1893_v28 = vpop.permute.xlu0 %1892 }
0x2f42   :  { %1895 = vst.msk [vmem:[#allocation2 + $0x30] sm:$0xff] %vm189_vm2, %v1893_v28 }
0x2f45   :  { %v2006_v13 = vld [vmem:[#allocation2 + $0x20] sm:$0xff] }
0x2f46   :  { %3467 = vmatprep.mubr.msk.f32.mxu0 %vm189_vm2, %v2006_v13 }
0x2f49   :  { %v2008_v11 = vld [vmem:[#allocation2 + $0x30] sm:$0xff] }
0x2f89   :  { %v2545_v16 = vpop.f32.mrb[26].mxu1 }
0x2f8a   :  { %v2549_v58 = vadd.f32 %v2545_v16, %v2128_v14  ;;  %v3492_v17 = vpop.f32.mrb[27].mxu1 }
0x2f8c   :  { %3788 = vtanh.f32 %v2549_v58  ;;  %v3101_v43 = vmul.f32 -1.442695, %v2549_v58 }
0x2f8e   :  { %3790 = vpow2.f32 %v3101_v43 }
0x2f96   :  { %v3789_v18 = vpop.eup %3788 }
0x2f97   :  { %2559 = vrot.lane.b32.xlu1 %v3789_v18, %s3837_s28 }
0x2f98   :  { %v3791_v19 = vpop.eup %3790 }
0x2f99   :  { %v2553_v20 = vadd.f32 1.0, %v3791_v19 }
0x2f9b   :  { %3792 = vrcp.f32 %v2553_v20 }
0x2fa5   :  { %v3793_v21 = vpop.eup %3792 }
0x2fa6   :  { %v2557_v25 = vmul.f32 %v3793_v21, %v2460_v62 }
0x3009   :  { %v2560_v23 = vpop.permute.xlu1 %2559 }
0x300a   :  { %v2562_v24 = vmul.f32 %v3793_v21, %v2560_v23 }
0x300c   :  { %2564 = vrot.lane.b32.xlu1 %v2562_v24, %s3838_s10 }
0x307e   :  { %v2565_v26 = vpop.permute.xlu1 %2564 }
0x307f   :  { %v2567_v56 = vadd.f32 %v2565_v26, %v2557_v25 }
0x3081   :  { %3794 = vtanh.f32 %v2567_v56 }
0x308b   :  { %v3795_v27 = vpop.eup %3794 }
0x308c   :  { %2570 = vrot.lane.b32.xlu1 %v3795_v27, %s3838_s10 }
0x3090   :  { %1786 = vrot.lane.b32.xlu1 %v1784_v29, %s3836_s4 }
0x3094   :  { %1998 = vrot.lane.b32.xlu1 %v1996_v15, %s3836_s4 }
0x30fe   :  { %v2571_v31 = vpop.permute.xlu1 %2570 }
0x30ff   :  { %v4373_v22 = vmul.f32 %v3793_v21, %v2571_v31 }
0x3101   :  { %2582 = vrot.lane.b32.xlu0 %v4373_v22, %s3839_s2 }
0x3102   :  { %v1787_v33 = vpop.permute.xlu1 %1786 }
0x3103   :  { %1789 = vst.msk [vmem:[#allocation2 + $0x28] sm:$0xff] %vm189_vm2, %v1787_v33 }
0x3106   :  { %v1999_v35 = vpop.permute.xlu1 %1998 }
0x3107   :  { %2001 = vst.msk [vmem:[#allocation2 + $0x38] sm:$0xff] %vm189_vm2, %v1999_v35 }
0x310a   :  { %v2007_v39 = vld [vmem:[#allocation2 + $0x28] sm:$0xff] }
0x310b   :  { %3468 = vmatmul.mubr.msk.f32.gmra.mrb[32].mxu0 %vm189_vm2, %v2007_v39 }
0x310c   :  { %3470 = vmatprep.mubr.msk.f32.mxu0 %vm189_vm2, %v2008_v11 }
0x310e   :  { %v2009_v60 = vld [vmem:[#allocation2 + $0x38] sm:$0xff] }
0x310f   :  { %3471 = vmatmul.mubr.msk.f32.gmra.mrb[34].mxu0 %vm189_vm2, %v2009_v60 }
0x3110   :  { %3495 = vmatprep.mubr.msk.f32.mxu0 %vm3833_vm1, %v3834_v4 }
0x3173   :  { %v2583_v40 = vpop.permute.xlu0 %2582 }
0x3174   :  { %3496 = vmatmul.mubr.msk.f32.vlgmr.msra.gmra.mrb[36].mxu0 %vm2151_vm4, %v2583_v40  ;;  %v3840_v40 = vmov 0  }
0x3175   :  { %3504 = vmatpush3.msk.msra.mxu0 %vm2154_vm3, %v4277_v32  ;;  %3505 = vmatprep.mubr.msk.f32.mxu0 %vm3833_vm1, %v3834_v4 }
0x3176   :  { %3634 = vset.pattern.permute.xlu1 %v3840_v40  ;;  %3635 = vset.pattern.permute.xlu0 %v3840_v40 }
0x31de   :  { %v3469_v41 = vpop.f32.mrb[32].mxu0 }
0x31df   :  { %v2132_v42 = vpop.f32.mrb[33].mxu0  ;;  %v2138_v38 = vadd.f32 %v3469_v41, %v4299_v49 }
0x31e0   :  { %v2133_v61 = vadd.f32 %v4299_v49, %v2132_v42 }
0x31e2   :  { %v4389_v44 = vpop.f32.mrb[34].mxu0 }
0x31e3   :  { %v2142_v45 = vpop.f32.mrb[35].mxu0  ;;  %v2148_v41 = vadd.f32 %v4389_v44, %v4299_v49 }
0x31e4   :  { %v2143_v19 = vadd.f32 %v4299_v49, %v2142_v45 }
0x3247   :  { %v2652_v46 = vpop.f32.mrb[36].mxu0 }
0x3248   :  { %v2656_v47 = vadd.f32 %v2652_v46, %v2133_v61  ;;  %v3497_v48 = vpop.f32.mrb[37].mxu0  ;;  %v38_v46 = vld [vmem:[%s4454_s0] sm:$0xff] }
0x3249   :  { %vm2253_vm5 = vcmp.eq.s32.totalorder %v38_v46, 1  ;;  %vm2467_vm6 = vcmp.eq.s32.totalorder %v38_v46, 3  ;;  %vm2574_vm7 = vcmp.eq.s32.totalorder %v38_v46, 4  ;;  %vm2788_vm8 = vcmp.eq.s32.totalorder %v38_v46, 6 }
0x324a   :  { %3796 = vtanh.f32 %v2656_v47  ;;  %v3104_v52 = vmul.f32 -1.442695, %v2656_v47  ;;  %v2254_v48 = vsel %vm2253_vm5, 1, %v3840_v40  ;;  %v2789_v49 = vsel %vm2788_vm8, 1, %v3840_v40 }
0x324b   :  { %vm3002_vm9 = vcmp.eq.s32.totalorder %v38_v46, 8  ;;  %vm2360_vm10 = vcmp.eq.s32.totalorder %v38_v46, 2  ;;  %vm2681_vm11 = vcmp.eq.s32.totalorder %v38_v46, 5  ;;  %vm2895_vm12 = vcmp.eq.s32.totalorder %v38_v46, 7 }
0x324c   :  { %3798 = vpow2.f32 %v3104_v52  ;;  %v2575_v52 = vsel %vm2574_vm7, 1, %v3840_v40  ;;  %v3003_v44 = vsel %vm3002_vm9, 1, %v3840_v40  ;;  %vm3009_vm5 = vcmask 97344  }
0x3254   :  { %v3797_v51 = vpop.eup %3796 }
0x3255   :  { %2666 = vrot.lane.b32.xlu1 %v3797_v51, %s3837_s28  ;;  %v2468_v51 = vsel %vm2467_vm6, 1, %v3840_v40 }
0x3256   :  { %v3799_v55 = vpop.eup %3798 }
0x3257   :  { %v2660_v62 = vadd.f32 1.0, %v3799_v55 }
0x3259   :  { %3800 = vrcp.f32 %v2660_v62 }
0x3263   :  { %v3801_v63 = vpop.eup %3800 }
0x3264   :  { %v2664_v5 = vmul.f32 %v3801_v63, %v2567_v56 }
0x32c7   :  { %v2667_v1 = vpop.permute.xlu1 %2666 }
0x32c8   :  { %v2669_v2 = vmul.f32 %v3801_v63, %v2667_v1 }
0x32ca   :  { %2671 = vrot.lane.b32.xlu0 %v2669_v2, %s3838_s10 }
0x333c   :  { %v2672_v54 = vpop.permute.xlu0 %2671 }
0x333d   :  { %v2674_v3 = vadd.f32 %v2672_v54, %v2664_v5  ;;  %v2361_v54 = vsel %vm2360_vm10, 1, %v3840_v40 }
0x333f   :  { %3802 = vtanh.f32 %v2674_v3 }
0x3349   :  { %v3803_v50 = vpop.eup %3802 }
0x334a   :  { %2677 = vrot.lane.b32.xlu1 %v3803_v50, %s3838_s10  ;;  %v2896_v50 = vsel %vm2895_vm12, 1, %v3840_v40 }
0x33bc   :  { %v2678_v7 = vpop.permute.xlu1 %2677 }
0x33bd   :  { %v4395_v10 = vmul.f32 %v3801_v63, %v2678_v7 }
0x33bf   :  { %2689 = vrot.lane.b32.xlu0 %v4395_v10, %s3839_s2 }
0x3431   :  { %v2690_v0 = vpop.permute.xlu0 %2689 }
0x3432   :  { %3501 = vmatmul.mubr.msk.f32.vlgmr.msra.gmra.mrb[28].mxu1 %vm2151_vm4, %v2690_v0 }
0x3433   :  { %3509 = vmatpush3.msk.msra.mxu1 %vm2154_vm3, %v4277_v32  ;;  %3510 = vmatprep.mubr.msk.f32.mxu1 %vm3833_vm1, %v3834_v4 }
0x3505   :  { %v2759_v8 = vpop.f32.mrb[28].mxu1 }
0x3506   :  { %v2763_v53 = vadd.f32 %v2759_v8, %v2138_v38  ;;  %v3502_v12 = vpop.f32.mrb[29].mxu1 }
0x3508   :  { %3804 = vtanh.f32 %v2763_v53  ;;  %v3107_v9 = vmul.f32 -1.442695, %v2763_v53 }
0x350a   :  { %3806 = vpow2.f32 %v3107_v9 }
0x3512   :  { %v3805_v37 = vpop.eup %3804 }
0x3513   :  { %2773 = vrot.lane.b32.xlu1 %v3805_v37, %s3837_s28 }
0x3514   :  { %v3807_v57 = vpop.eup %3806 }
0x3515   :  { %v2767_v36 = vadd.f32 1.0, %v3807_v57 }
0x3517   :  { %3808 = vrcp.f32 %v2767_v36 }
0x3521   :  { %v3809_v28 = vpop.eup %3808 }
0x3522   :  { %v2771_v4 = vmul.f32 %v3809_v28, %v2674_v3  ;;  %v2682_v3 = vsel %vm2681_vm11, 1, %v3840_v40 }
0x3585   :  { %v2774_v13 = vpop.permute.xlu1 %2773 }
0x3586   :  { %v2776_v32 = vmul.f32 %v3809_v28, %v2774_v13 }
0x3588   :  { %2778 = vrot.lane.b32.xlu0 %v2776_v32, %s3838_s10 }
0x35fa   :  { %v2779_v14 = vpop.permute.xlu0 %2778 }
0x35fb   :  { %v2781_v16 = vadd.f32 %v2779_v14, %v2771_v4 }
0x35fd   :  { %3810 = vtanh.f32 %v2781_v16 }
0x3607   :  { %v3811_v58 = vpop.eup %3810 }
0x3608   :  { %2784 = vrot.lane.b32.xlu1 %v3811_v58, %s3838_s10 }
0x367a   :  { %v2785_v17 = vpop.permute.xlu1 %2784 }
0x367b   :  { %v4408_v18 = vmul.f32 %v3809_v28, %v2785_v17 }
0x367d   :  { %2796 = vrot.lane.b32.xlu0 %v4408_v18, %s3839_s2 }
0x36ef   :  { %v2797_v43 = vpop.permute.xlu0 %2796 }
0x36f0   :  { %3506 = vmatmul.mubr.msk.f32.vlgmr.msra.gmra.mrb[38].mxu0 %vm2151_vm4, %v2797_v43 }
0x37c3   :  { %v2866_v20 = vpop.f32.mrb[38].mxu0 }
0x37c4   :  { %v2870_v21 = vadd.f32 %v2866_v20, %v2143_v19  ;;  %v3507_v23 = vpop.f32.mrb[39].mxu0 }
0x37c6   :  { %3812 = vtanh.f32 %v2870_v21  ;;  %v3110_v25 = vmul.f32 -1.442695, %v2870_v21 }
0x37c8   :  { %3814 = vpow2.f32 %v3110_v25 }
0x37d0   :  { %v3813_v24 = vpop.eup %3812 }
0x37d1   :  { %2880 = vrot.lane.b32.xlu1 %v3813_v24, %s3837_s28 }
0x37d2   :  { %v3815_v26 = vpop.eup %3814 }
0x37d3   :  { %v2874_v56 = vadd.f32 1.0, %v3815_v26 }
0x37d5   :  { %3816 = vrcp.f32 %v2874_v56 }
0x37df   :  { %v3817_v27 = vpop.eup %3816 }
0x37e0   :  { %v2878_v15 = vmul.f32 %v3817_v27, %v2781_v16 }
0x3843   :  { %v2881_v29 = vpop.permute.xlu1 %2880 }
0x3844   :  { %v2883_v30 = vmul.f32 %v3817_v27, %v2881_v29 }
0x3846   :  { %2885 = vrot.lane.b32.xlu0 %v2883_v30, %s3838_s10 }
0x38b8   :  { %v2886_v31 = vpop.permute.xlu0 %2885 }
0x38b9   :  { %v2888_v33 = vadd.f32 %v2886_v31, %v2878_v15 }
0x38bb   :  { %3818 = vtanh.f32 %v2888_v33 }
0x38c5   :  { %v3819_v35 = vpop.eup %3818 }
0x38c6   :  { %2891 = vrot.lane.b32.xlu1 %v3819_v35, %s3838_s10 }
0x3938   :  { %v2892_v39 = vpop.permute.xlu1 %2891 }
0x3939   :  { %v4417_v11 = vmul.f32 %v3817_v27, %v2892_v39 }
0x393b   :  { %2903 = vrot.lane.b32.xlu0 %v4417_v11, %s3839_s2 }
0x39ad   :  { %v2904_v60 = vpop.permute.xlu0 %2903 }
0x39ae   :  { %3511 = vmatmul.mubr.msk.f32.vlgmr.msra.gmra.mrb[30].mxu1 %vm2151_vm4, %v2904_v60 }
0x3a81   :  { %v2973_v42 = vpop.f32.mrb[30].mxu1 }
0x3a82   :  { %v2977_v45 = vadd.f32 %v2973_v42, %v2148_v41  ;;  %v3512_v61 = vpop.f32.mrb[31].mxu1 }
0x3a84   :  { %3820 = vtanh.f32 %v2977_v45  ;;  %v3113_v55 = vmul.f32 -1.442695, %v2977_v45 }
0x3a86   :  { %3822 = vpow2.f32 %v3113_v55 }
0x3a8e   :  { %v3821_v47 = vpop.eup %3820 }
0x3a8f   :  { %2987 = vrot.lane.b32.xlu1 %v3821_v47, %s3837_s28 }
0x3a90   :  { %v3823_v62 = vpop.eup %3822 }
0x3a91   :  { %v2981_v63 = vadd.f32 1.0, %v3823_v62 }
0x3a93   :  { %2256 = vperm.xlu1 %3634, %v2254_v48   ;;  %3824 = vrcp.f32 %v2981_v63 }
0x3a97   :  { %2470 = vperm.xlu1 %3634, %v2468_v51  }
0x3a9b   :  { %2577 = vperm.xlu1 %3634, %v2575_v52  }
0x3a9d   :  { %v3825_v1 = vpop.eup %3824 }
0x3a9e   :  { %v2985_v7 = vmul.f32 %v3825_v1, %v2888_v33 }
0x3a9f   :  { %2791 = vperm.xlu1 %3634, %v2789_v49  }
0x3aa3   :  { %3005 = vperm.xlu1 %3634, %v3003_v44  }
0x3b01   :  { %v2988_v2 = vpop.permute.xlu1 %2987 }
0x3b02   :  { %v2990_v5 = vmul.f32 %v3825_v1, %v2988_v2 }
0x3b04   :  { %2992 = vrot.lane.b32.xlu0 %v2990_v5, %s3838_s10 }
0x3b08   :  { %2363 = vperm.xlu0 %3635, %v2361_v54  }
0x3b0c   :  { %2684 = vperm.xlu0 %3635, %v2682_v3  }
0x3b10   :  { %2898 = vperm.xlu0 %3635, %v2896_v50  }
0x3b12   :  { %v2257_v53 = vpop.permute.xlu1 %2256 }
0x3b13   :  { %vm2258_vm13 = vcmp.eq.s32.totalorder %v2257_v53, 1 }
0x3b14   :  { %v2259_v9 = vsel %vm2258_vm13, %v4307_v59, 0.0 }
0x3b16   :  { %v2471_v12 = vpop.permute.xlu1 %2470 }
0x3b17   :  { %vm2472_vm15 = vcmp.eq.s32.totalorder %v2471_v12, 1 }
0x3b1a   :  { %v2578_v36 = vpop.permute.xlu1 %2577 }
0x3b1b   :  { %vm2579_vm0 = vcmp.eq.s32.totalorder %v2578_v36, 1 }
0x3b1e   :  { %v2792_v4 = vpop.permute.xlu1 %2791 }
0x3b1f   :  { %vm2793_vm2 = vcmp.eq.s32.totalorder %v2792_v4, 1 }
0x3b22   :  { %v3006_v58 = vpop.permute.xlu1 %3005 }
0x3b23   :  { %vm3007_vm6 = vcmp.eq.s32.totalorder %v3006_v58, 1 }
0x3b76   :  { %v2993_v0 = vpop.permute.xlu0 %2992 }
0x3b77   :  { %v2995_v38 = vadd.f32 %v2993_v0, %v2985_v7 }
0x3b79   :  { %3826 = vtanh.f32 %v2995_v38 }
0x3b83   :  { %v3827_v8 = vpop.eup %3826 }
0x3b84   :  { %2998 = vrot.lane.b32.xlu0 %v3827_v8, %s3838_s10 }
0x3b87   :  { %v2364_v37 = vpop.permute.xlu0 %2363 }
0x3b88   :  { %vm2365_vm14 = vcmp.eq.s32.totalorder %v2364_v37, 1 }
0x3b89   :  { %v2366_v57 = vsel %vm2365_vm14, %v4327_v34, %v2259_v9 }
0x3b8a   :  { %v2473_v13 = vsel %vm2472_vm15, %v4346_v6, %v2366_v57 }
0x3b8b   :  { %v2685_v28 = vpop.permute.xlu0 %2684  ;;  %v2580_v32 = vsel %vm2579_vm0, %v4373_v22, %v2473_v13 }
0x3b8c   :  { %vm2686_vm1 = vcmp.eq.s32.totalorder %v2685_v28, 1 }
0x3b8d   :  { %v2687_v16 = vsel %vm2686_vm1, %v4395_v10, %v2580_v32 }
0x3b8e   :  { %v2794_v59 = vsel %vm2793_vm2, %v4408_v18, %v2687_v16 }
0x3b8f   :  { %v2899_v14 = vpop.permute.xlu0 %2898 }
0x3b90   :  { %vm2900_vm3 = vcmp.eq.s32.totalorder %v2899_v14, 1 }
0x3b91   :  { %v2901_v34 = vsel %vm2900_vm3, %v4417_v11, %v2794_v59 }
0x3bf6   :  { %v2999_v17 = vpop.permute.xlu0 %2998 }
0x3bf7   :  { %v3001_v43 = vmul.f32 %v3825_v1, %v2999_v17 }
0x3bf9   :  { %v3008_v6 = vsel %vm3007_vm6, %v3001_v43, %v2901_v34 }
0x3bfa   :  { %v3010_v19 = vsel %vm3009_vm5, %v3008_v6, -inf }
0x3bfb   :  { %3011 = vmax.xlane.f32.xlu1 %v3010_v19 }
0x3c88   :  { %v3012_v22 = vpop.xlane.xlu1 %3011 }
0x3c89   :  { %v3013_v20 = vsub.f32 %v3008_v6, %v3012_v22 }
0x3c8b   :  { %v3014_v21 = vmul.f32 1.442695, %v3013_v20 }
0x3c8d   :  { %3828 = vpow2.f32 %v3014_v21 }
0x3c97   :  { %v3829_v23 = vpop.eup %3828 }
0x3c98   :  { %3017 = vrot.lane.b32.xlu0 %v3829_v23, %s3839_s2 }
0x3d0a   :  { %v3018_v10 = vpop.permute.xlu0 %3017 }
0x3d0b   :  { %v3020_v24 = vsel %vm2151_vm4, %v3018_v10, 0.0 }
0x3d0c   :  { %3021 = vadd.xlane.f32.xlu0 %v3020_v24 }
0x3d99   :  { %v3022_v18 = vpop.xlane.xlu0 %3021 }
0x3d9a   :  { %3830 = vrcp.f32 %v3022_v18 }
0x3da4   :  { %v3831_v25 = vpop.eup %3830 }
0x3da5   :  { %v3024_v26 = vmul.f32 %v3831_v25, %v3829_v23 }
0x3da7   :  { %3026 = vrot.lane.b32.xlu1 %v3024_v26, %s3839_s2 }
0x3e19   :  { %v3027_v56 = vpop.permute.xlu1 %3026 }
0x3e1a   :  { %3029 = vst.msk [vmem:[%s4455_s11] sm:$0xff] %vm2151_vm4, %v3027_v56 }

</bundles_post_ra>
